<compile_context>
chip_gen: v6e
topology: v6e:2x2x1
jax: 0.10.0
libtpu: 0.0.40
codegen_flags: <defaults>
</compile_context>

<pallas_src>
import jax
import jax.numpy as jnp
from jax.experimental import pallas as pl
from jax.experimental.pallas import tpu as pltpu


# ------------------------------ fused kernel ------------------------------- #

def _egnn_fused_kernel(
    # layer-invariant inputs (constant index maps -> DMA'd once, resident)
    h0_ref, radattr_ref, srow_ref, scol_ref, srowm_ref, gmat_ref,
    embw_ref, cbias_ref,
    # per-layer stacked weights (sliced by the grid index)
    wein_ref, weaux_ref, we2_ref, wnode_ref, wn2_ref, laux_ref,
    # decoder weights (constant, only used at the last iteration)
    wd1_ref, wd2_ref, wg1_ref, wg2_ref, bg2_ref,
    # outputs (resident across the layer axis)
    h_ref, pred_ref):
  l = pl.program_id(0)
  last = pl.num_programs(0) - 1
  HP = h_ref.shape[1]

  # ---- embedding fused into the first iteration --------------------------- #
  @pl.when(l == 0)
  def _embed():
    h_ref[...] = (jnp.dot(h0_ref[...], embw_ref[...],
                          preferred_element_type=jnp.float32)
                  + cbias_ref[0:1])

  # current h (resident output block carries it across layers)
  h = h_ref[...]                                                  # [N, HP] f32
  hb = h.astype(jnp.bfloat16)

  aux = laux_ref[...]                                             # [4, HP] f32
  be1, be2, bn1, bn2 = aux[0:1], aux[1:2], aux[2:3], aux[3:4]

  # ---- edge model --------------------------------------------------------- #
  # (1) single [HP, 2*HP] projection at node level, then gather with one-hots
  ph = jnp.dot(hb, wein_ref[...], preferred_element_type=jnp.float32)  # [N,2HP]
  phb = ph.astype(jnp.bfloat16)
  # (3) radial|edge_attr packed operand against the stacked [w_rad; w_att]
  z = (jnp.dot(srow_ref[...], phb[:, :HP],
               preferred_element_type=jnp.float32)
       + jnp.dot(scol_ref[...], phb[:, HP:],
                 preferred_element_type=jnp.float32)
       + jnp.dot(radattr_ref[...], weaux_ref[...],
                 preferred_element_type=jnp.float32)
       + be1)                                                     # [E, HP] f32
  z = jax.nn.silu(z)
  edge_feat = jax.nn.silu(
      jnp.dot(z.astype(jnp.bfloat16), we2_ref[...],
              preferred_element_type=jnp.float32) + be2)          # [E, HP] f32

  # ---- unsorted_segment_sum over `row` ------------------------------------ #
  # (4) edge_mask / neighborhood / prune masking is pre-folded into srowm
  # (exact for the segment sum); contract on the edge axis directly.
  agg = jax.lax.dot_general(
      srowm_ref[...], edge_feat.astype(jnp.bfloat16),
      dimension_numbers=(((0,), (0,)), ((), ())),
      preferred_element_type=jnp.float32)                         # [N, HP]

  # ---- node model (recurrent=True -> residual) ----------------------------- #
  # (2) one fused matmul over the concatenated [h | agg | h0] input
  zn_in = jnp.concatenate([hb, agg.astype(jnp.bfloat16), h0_ref[...]],
                          axis=1)                                 # [N, 2HP+INP]
  zn = jax.nn.silu(jnp.dot(zn_in, wnode_ref[...],
                           preferred_element_type=jnp.float32) + bn1)
  h_new = h + (jnp.dot(zn.astype(jnp.bfloat16), wn2_ref[...],
                       preferred_element_type=jnp.float32) + bn2)
  h_ref[...] = h_new

  # ---- node_dec / mask / per-graph pool / graph_dec, fused into last iter -- #
  @pl.when(l == last)
  def _decode():
    cb = cbias_ref[...]                                           # [4, HP] f32
    zd = jax.nn.silu(
        jnp.dot(h_new.astype(jnp.bfloat16), wd1_ref[...],
                preferred_element_type=jnp.float32) + cb[1:2])
    hd = (jnp.dot(zd.astype(jnp.bfloat16), wd2_ref[...],
                  preferred_element_type=jnp.float32) + cb[2:3])
    # node_mask is folded into gmat (pooling sum) -> exact
    hg = jnp.dot(gmat_ref[...], hd.astype(jnp.bfloat16),
                 preferred_element_type=jnp.float32)              # [B, HP]
    zg = jax.nn.silu(
        jnp.dot(hg.astype(jnp.bfloat16), wg1_ref[...],
                preferred_element_type=jnp.float32) + cb[3:4])
    # (13) lane-dense decoder output: wg2/bg2 padded to 128 output lanes
    pred_ref[...] = (jnp.dot(zg.astype(jnp.bfloat16), wg2_ref[...],
                             preferred_element_type=jnp.float32)
                     + bg2_ref[...])


# ------------------------------ parameters --------------------------------- #

def init_params(key, in_node_nf, in_edge_nf, hidden_nf, n_layers,
                lane_tile=128):
  """Random params, fused/stacked and lane-padded for the kernel.

  hidden_nf is zero-padded to HP (multiple of 128); padded lanes stay exactly
  zero through every linear+SiLU, so the first hidden_nf lanes match the
  unpadded model (up to bf16 mixed precision).  Per the review, HP is NOT
  padded beyond 128 — MXU width comes from operand concatenation instead.
  """
  HP = -(-hidden_nf // lane_tile) * lane_tile
  INP = -(-in_node_nf // lane_tile) * lane_tile        # padded node-feat width
  H = hidden_nf

  def dense(k, fan_in, fan_out):
    k1, k2 = jax.random.split(k)
    w = jax.random.normal(k1, (fan_in, fan_out), jnp.float32) / jnp.sqrt(fan_in)
    b = 0.01 * jax.random.normal(k2, (1, fan_out), jnp.float32)
    return w, b

  padc = lambda a, to: jnp.pad(a, ((0, 0), (0, to - a.shape[1])))
  padr = lambda a, to: jnp.pad(a, ((0, to - a.shape[0]), (0, 0)))

  keys = jax.random.split(key, n_layers + 2)

  emb_w, emb_b = dense(keys[0], in_node_nf, H)
  emb_w = padr(padc(emb_w, HP), INP).astype(jnp.bfloat16)         # [INP, HP]
  emb_b = padc(emb_b, HP)                                         # [1, HP] f32

  W_ein, W_eaux, W_e2, W_node, W_n2, Laux = ([] for _ in range(6))
  for i in range(n_layers):
    lk = jax.random.split(keys[1 + i], 9)
    we_src, be1 = dense(lk[0], H, H)
    we_tgt, _ = dense(lk[1], H, H)
    we_rad, _ = dense(lk[2], 1, H)
    we_att, _ = dense(lk[3], in_edge_nf, H)
    we2, be2 = dense(lk[4], H, H)
    wn_h, bn1 = dense(lk[5], H, H)
    wn_agg, _ = dense(lk[6], H, H)
    wn_h0, _ = dense(lk[7], in_node_nf, H)
    wn2, bn2 = dense(lk[8], H, H)
    # (1) fused edge-input projection: [HP, 2*HP]
    W_ein.append(jnp.concatenate(
        [padr(padc(we_src, HP), HP), padr(padc(we_tgt, HP), HP)], axis=1))
    # (3) fused [radial | edge_attr] projection: [1+in_edge_nf, HP]
    W_eaux.append(jnp.concatenate([padc(we_rad, HP), padc(we_att, HP)], axis=0))
    W_e2.append(padr(padc(we2, HP), HP))
    # (2) fused node-model matmul: [2*HP + INP, HP]
    W_node.append(jnp.concatenate(
        [padr(padc(wn_h, HP), HP), padr(padc(wn_agg, HP), HP),
         padr(padc(wn_h0, HP), INP)], axis=0))
    W_n2.append(padr(padc(wn2, HP), HP))
    # f32 bias stack per layer: [be1, be2, bn1, bn2]
    Laux.append(jnp.concatenate(
        [padc(be1, HP), padc(be2, HP), padc(bn1, HP), padc(bn2, HP)], axis=0))

  sb = lambda xs: jnp.stack(xs).astype(jnp.bfloat16)
  W_ein, W_eaux, W_e2 = sb(W_ein), sb(W_eaux), sb(W_e2)
  W_node, W_n2 = sb(W_node), sb(W_n2)
  Laux = jnp.stack(Laux)                                          # [L, 4, HP]

  dk = jax.random.split(keys[-1], 4)
  wd1, bd1 = dense(dk[0], H, H)
  wd2, bd2 = dense(dk[1], H, H)
  wg1, bg1 = dense(dk[2], H, H)
  wg2, bg2 = dense(dk[3], H, 1)
  wd1 = padr(padc(wd1, HP), HP).astype(jnp.bfloat16)
  wd2 = padr(padc(wd2, HP), HP).astype(jnp.bfloat16)
  wg1 = padr(padc(wg1, HP), HP).astype(jnp.bfloat16)
  wg2 = padr(padc(wg2, lane_tile), HP).astype(jnp.bfloat16)       # [HP, 128]
  bg2 = padc(bg2, lane_tile)                                      # [1, 128] f32
  # constant f32 bias stack: [emb_b, bd1, bd2, bg1]
  cbias = jnp.concatenate(
      [emb_b, padc(bd1, HP), padc(bd2, HP), padc(bg1, HP)], axis=0)  # [4, HP]

  return (emb_w, cbias, W_ein, W_eaux, W_e2, W_node, W_n2, Laux,
          wd1, wd2, wg1, wg2, bg2)


# ----------------------------- forward wrapper ------------------------------ #

def _const_spec(a):
  nd = a.ndim
  def imap(l):
    return (0,) * nd
  return pl.BlockSpec(tuple(a.shape), imap)


def _layer_spec(a):
  nd = a.ndim
  def imap(l):
    return (l,) + (0,) * (nd - 1)
  return pl.BlockSpec((None,) + tuple(a.shape[1:]), imap)


@jax.jit
def egnn_forward(params, h0, x, edge_attr, node_mask, edge_mask, importance,
                 s_row, s_col, g_mat):
  (emb_w, cbias, W_ein, W_eaux, W_e2, W_node, W_n2, Laux,
   wd1, wd2, wg1, wg2, bg2) = params
  L = W_ein.shape[0]
  INP, HP = emb_w.shape
  N = h0.shape[0]
  E = s_row.shape[0]
  B = g_mat.shape[0]

  # ---- layer-invariant geometry & edge masks, computed once (coords are a
  # pass-through in E_GCL_mask, so radial / masks never change across layers)
  diff = s_row @ x - s_col @ x                                   # [E, 3]
  radial = jnp.sum(diff * diff, axis=-1, keepdims=True)          # [E, 1]
  neigh = (radial < 0.25).astype(jnp.float32)        # ||diff|| < 0.5, no sqrt
  prune = (jnp.abs(importance) > 0.1).astype(jnp.float32)
  valid = edge_mask * neigh * prune                              # [E, 1]

  # Packed / pre-masked kernel operands (review items 3, 4, 5):
  rad_attr = jnp.concatenate([radial, edge_attr], axis=1).astype(jnp.bfloat16)
  s_row_b = s_row.astype(jnp.bfloat16)                           # gather (row)
  s_col_b = s_col.astype(jnp.bfloat16)                           # gather (col)
  s_row_m = (s_row * valid).astype(jnp.bfloat16)                 # masked scatter
  g_mat_m = (g_mat * node_mask[:, 0][None, :]).astype(jnp.bfloat16)
  h0p = jnp.pad(h0, ((0, 0), (0, INP - h0.shape[1]))).astype(jnp.bfloat16)

  const_in = (h0p, rad_attr, s_row_b, s_col_b, s_row_m, g_mat_m, emb_w, cbias)
  layer_in = (W_ein, W_eaux, W_e2, W_node, W_n2, Laux)
  tail_in = (wd1, wd2, wg1, wg2, bg2)

  # (7) vmem limit sized from the actual resident set (double-buffered consts
  # + 2x per-layer weight slices + outputs), clamped to a safe range.
  def nbytes(a):
    return int(a.size) * jnp.dtype(a.dtype).itemsize
  resident = (2 * sum(nbytes(a) for a in const_in + tail_in)
              + 2 * sum(nbytes(a) // a.shape[0] for a in layer_in)
              + 2 * (N * HP * 4 + B * 128 * 4))
  vmem_limit = int(min(64 * 1024 * 1024,
                       max(32 * 1024 * 1024, 4 * resident)))

  _, pred = pl.pallas_call(
      _egnn_fused_kernel,
      out_shape=(jax.ShapeDtypeStruct((N, HP), jnp.float32),     # final h
                 jax.ShapeDtypeStruct((B, 128), jnp.float32)),   # lane-dense pred
      grid_spec=pltpu.PrefetchScalarGridSpec(
          num_scalar_prefetch=0,
          grid=(L,),
          in_specs=([_const_spec(a) for a in const_in]
                    + [_layer_spec(a) for a in layer_in]
                    + [_const_spec(a) for a in tail_in]),
          out_specs=[pl.BlockSpec((N, HP), lambda l: (0, 0)),
                     pl.BlockSpec((B, 128), lambda l: (0, 0))]),
      compiler_params=pltpu.CompilerParams(
          dimension_semantics=("arbitrary",),                    # h is carried
          vmem_limit_bytes=vmem_limit),
  )(*const_in, *layer_in, *tail_in)
  return pred[:, 0]                                              # .squeeze(1)


# ---------------------------------- demo ------------------------------------ #

if __name__ == "__main__":
  key = jax.random.PRNGKey(0)
  batch, n_nodes = 2, 8
  in_node_nf, in_edge_nf, hidden_nf, n_layers = 5, 4, 32, 4
  N = batch * n_nodes

  # fully connected edges (no self loops) within each graph
  rows, cols = [], []
  for b in range(batch):
    for i in range(n_nodes):
      for j in range(n_nodes):
        if i != j:
          rows.append(b * n_nodes + i)
          cols.append(b * n_nodes + j)
  E = len(rows)
  rows = jnp.array(rows, jnp.int32)
  cols = jnp.array(cols, jnp.int32)
  s_row = jax.nn.one_hot(rows, N, dtype=jnp.float32)             # [E, N]
  s_col = jax.nn.one_hot(cols, N, dtype=jnp.float32)             # [E, N]
  graph_id = jnp.repeat(jnp.arange(batch, dtype=jnp.int32), n_nodes)
  g_mat = jax.nn.one_hot(graph_id, batch, dtype=jnp.float32).T   # [B, N]

  k = jax.random.split(key, 6)
  h0 = jax.random.normal(k[0], (N, in_node_nf), jnp.float32)
  x = 0.3 * jax.random.normal(k[1], (N, 3), jnp.float32)
  edge_attr = jax.random.normal(k[2], (E, in_edge_nf), jnp.float32)
  node_mask = jnp.ones((N, 1), jnp.float32)
  edge_mask = (s_row @ node_mask) * (s_col @ node_mask)          # [E, 1]
  importance = jax.random.uniform(k[3], (E, 1), jnp.float32)     # |edge_attr.grad| stand-in

  params = init_params(k[4], in_node_nf, in_edge_nf, hidden_nf, n_layers)

  pred = egnn_forward(params, h0, x, edge_attr, node_mask, edge_mask,
                      importance, s_row, s_col, g_mat)
  jax.block_until_ready(pred)
  assert pred.shape == (batch,)
  print("KERNEL_OK")
</pallas_src>

<mosaic_0001>
module attributes {stable_mosaic.version = 11 : i64} {
  func.func @_egnn_fused_kernel(%arg0: i32, %arg1: memref<16x128xbf16, #tpu.memory_space<vmem>>, %arg2: memref<112x5xbf16, #tpu.memory_space<vmem>>, %arg3: memref<112x16xbf16, #tpu.memory_space<vmem>>, %arg4: memref<112x16xbf16, #tpu.memory_space<vmem>>, %arg5: memref<112x16xbf16, #tpu.memory_space<vmem>>, %arg6: memref<2x16xbf16, #tpu.memory_space<vmem>>, %arg7: memref<128x128xbf16, #tpu.memory_space<vmem>>, %arg8: memref<4x128xf32, #tpu.memory_space<vmem>>, %arg9: memref<1x128x256xbf16, #tpu.memory_space<vmem>>, %arg10: memref<1x5x128xbf16, #tpu.memory_space<vmem>>, %arg11: memref<1x128x128xbf16, #tpu.memory_space<vmem>>, %arg12: memref<1x384x128xbf16, #tpu.memory_space<vmem>>, %arg13: memref<1x128x128xbf16, #tpu.memory_space<vmem>>, %arg14: memref<1x4x128xf32, #tpu.memory_space<vmem>>, %arg15: memref<128x128xbf16, #tpu.memory_space<vmem>>, %arg16: memref<128x128xbf16, #tpu.memory_space<vmem>>, %arg17: memref<128x128xbf16, #tpu.memory_space<vmem>>, %arg18: memref<128x128xbf16, #tpu.memory_space<vmem>>, %arg19: memref<1x128xf32, #tpu.memory_space<vmem>>, %arg20: memref<16x128xf32, #tpu.memory_space<vmem>>, %arg21: memref<2x128xf32, #tpu.memory_space<vmem>>) attributes {dimension_semantics = [#tpu.dimension_semantics<arbitrary>], iteration_bounds = array<i64: 4>, scalar_prefetch = 0 : i64, scratch_operands = 0 : i64, tpu.core_type = #tpu.core_type<tc>, window_params = [{pipeline_mode = #tpu.pipeline_mode<synchronous>, transform_indices = @transform_0, window_bounds = array<i64: 16, 128>}, {pipeline_mode = #tpu.pipeline_mode<synchronous>, transform_indices = @transform_1, window_bounds = array<i64: 112, 5>}, {pipeline_mode = #tpu.pipeline_mode<synchronous>, transform_indices = @transform_2, window_bounds = array<i64: 112, 16>}, {pipeline_mode = #tpu.pipeline_mode<synchronous>, transform_indices = @transform_3, window_bounds = array<i64: 112, 16>}, {pipeline_mode = #tpu.pipeline_mode<synchronous>, transform_indices = @transform_4, window_bounds = array<i64: 112, 16>}, {pipeline_mode = #tpu.pipeline_mode<synchronous>, transform_indices = @transform_5, window_bounds = array<i64: 2, 16>}, {pipeline_mode = #tpu.pipeline_mode<synchronous>, transform_indices = @transform_6, window_bounds = array<i64: 128, 128>}, {pipeline_mode = #tpu.pipeline_mode<synchronous>, transform_indices = @transform_7, window_bounds = array<i64: 4, 128>}, {transform_indices = @transform_8, window_bounds = array<i64: 1, 128, 256>}, {transform_indices = @transform_9, window_bounds = array<i64: 1, 5, 128>}, {transform_indices = @transform_10, window_bounds = array<i64: 1, 128, 128>}, {transform_indices = @transform_11, window_bounds = array<i64: 1, 384, 128>}, {transform_indices = @transform_12, window_bounds = array<i64: 1, 128, 128>}, {transform_indices = @transform_13, window_bounds = array<i64: 1, 4, 128>}, {pipeline_mode = #tpu.pipeline_mode<synchronous>, transform_indices = @transform_14, window_bounds = array<i64: 128, 128>}, {pipeline_mode = #tpu.pipeline_mode<synchronous>, transform_indices = @transform_15, window_bounds = array<i64: 128, 128>}, {pipeline_mode = #tpu.pipeline_mode<synchronous>, transform_indices = @transform_16, window_bounds = array<i64: 128, 128>}, {pipeline_mode = #tpu.pipeline_mode<synchronous>, transform_indices = @transform_17, window_bounds = array<i64: 128, 128>}, {pipeline_mode = #tpu.pipeline_mode<synchronous>, transform_indices = @transform_18, window_bounds = array<i64: 1, 128>}, {pipeline_mode = #tpu.pipeline_mode<synchronous>, transform_indices = @transform_19, window_bounds = array<i64: 16, 128>}, {pipeline_mode = #tpu.pipeline_mode<synchronous>, transform_indices = @transform_20, window_bounds = array<i64: 2, 128>}]} {
    %c0_i32 = arith.constant 0 : i32
    %0 = arith.cmpi eq, %arg0, %c0_i32 : i32
    %1 = arith.extui %0 : i1 to i32
    %c0_i32_0 = arith.constant 0 : i32
    %2 = arith.cmpi ne, %1, %c0_i32_0 : i32
    scf.if %2 {
      %c0_43 = arith.constant 0 : index
      %c0_44 = arith.constant 0 : index
      %75 = vector.load %arg1[%c0_43, %c0_44] : memref<16x128xbf16, #tpu.memory_space<vmem>>, vector<16x128xbf16>
      %c0_45 = arith.constant 0 : index
      %c0_46 = arith.constant 0 : index
      %76 = vector.load %arg7[%c0_45, %c0_46] : memref<128x128xbf16, #tpu.memory_space<vmem>>, vector<128x128xbf16>
      %cst_47 = arith.constant dense<0.000000e+00> : vector<16x128xf32>
      %77 = tpu.matmul %75, %76, %cst_47 {dimension_numbers = #tpu.dot_dimension_numbers<[1], [0], [0], [1], [0, 0, 1, 1], [], []>} : vector<16x128xbf16>, vector<128x128xbf16>, vector<16x128xf32> -> vector<16x128xf32>
      %c0_48 = arith.constant 0 : index
      %c0_49 = arith.constant 0 : index
      %78 = vector.load %arg8[%c0_48, %c0_49] : memref<4x128xf32, #tpu.memory_space<vmem>>, vector<1x128xf32>
      %79 = vector.broadcast %78 : vector<1x128xf32> to vector<16x128xf32>
      %80 = arith.addf %77, %79 : vector<16x128xf32>
      %c0_50 = arith.constant 0 : index
      %c0_51 = arith.constant 0 : index
      %81 = vector.load %arg20[%c0_50, %c0_51] : memref<16x128xf32, #tpu.memory_space<vmem>>, vector<16x128xf32>
      tpu.vector_store %arg20[%c0_50, %c0_51], %80 {strides = array<i32>} : memref<16x128xf32, #tpu.memory_space<vmem>>, vector<16x128xf32>,
    } else {
    }
    %c0 = arith.constant 0 : index
    %c0_1 = arith.constant 0 : index
    %3 = vector.load %arg20[%c0, %c0_1] : memref<16x128xf32, #tpu.memory_space<vmem>>, vector<16x128xf32>
    %4 = arith.truncf %3 : vector<16x128xf32> to vector<16x128xbf16>
    %c0_2 = arith.constant 0 : index
    %c0_3 = arith.constant 0 : index
    %c0_4 = arith.constant 0 : index
    %5 = vector.load %arg14[%c0_2, %c0_3, %c0_4] : memref<1x4x128xf32, #tpu.memory_space<vmem>>, vector<1x4x128xf32>
    %6 = vector.shape_cast %5 : vector<1x4x128xf32> to vector<4x128xf32>
    %7 = vector.extract_strided_slice %6 {offsets = [0, 0], sizes = [1, 128], strides = [1, 1]} : vector<4x128xf32> to vector<1x128xf32>
    %8 = vector.extract_strided_slice %6 {offsets = [1, 0], sizes = [1, 128], strides = [1, 1]} : vector<4x128xf32> to vector<1x128xf32>
    %9 = vector.extract_strided_slice %6 {offsets = [2, 0], sizes = [1, 128], strides = [1, 1]} : vector<4x128xf32> to vector<1x128xf32>
    %10 = vector.extract_strided_slice %6 {offsets = [3, 0], sizes = [1, 128], strides = [1, 1]} : vector<4x128xf32> to vector<1x128xf32>
    %c0_5 = arith.constant 0 : index
    %c0_6 = arith.constant 0 : index
    %c0_7 = arith.constant 0 : index
    %11 = vector.load %arg9[%c0_5, %c0_6, %c0_7] : memref<1x128x256xbf16, #tpu.memory_space<vmem>>, vector<1x128x256xbf16>
    %12 = vector.shape_cast %11 : vector<1x128x256xbf16> to vector<128x256xbf16>
    %cst = arith.constant dense<0.000000e+00> : vector<16x256xf32>
    %13 = tpu.matmul %4, %12, %cst {dimension_numbers = #tpu.dot_dimension_numbers<[1], [0], [0], [1], [0, 0, 1, 1], [], []>} : vector<16x128xbf16>, vector<128x256xbf16>, vector<16x256xf32> -> vector<16x256xf32>
    %14 = arith.truncf %13 : vector<16x256xf32> to vector<16x256xbf16>
    %c0_8 = arith.constant 0 : index
    %c0_9 = arith.constant 0 : index
    %15 = vector.load %arg3[%c0_8, %c0_9] : memref<112x16xbf16, #tpu.memory_space<vmem>>, vector<112x16xbf16>
    %16 = vector.extract_strided_slice %14 {offsets = [0, 0], sizes = [16, 128], strides = [1, 1]} : vector<16x256xbf16> to vector<16x128xbf16>
    %cst_10 = arith.constant dense<0.000000e+00> : vector<112x128xf32>
    %17 = tpu.matmul %15, %16, %cst_10 {dimension_numbers = #tpu.dot_dimension_numbers<[1], [0], [0], [1], [0, 0, 1, 1], [], []>} : vector<112x16xbf16>, vector<16x128xbf16>, vector<112x128xf32> -> vector<112x128xf32>
    %c0_11 = arith.constant 0 : index
    %c0_12 = arith.constant 0 : index
    %18 = vector.load %arg4[%c0_11, %c0_12] : memref<112x16xbf16, #tpu.memory_space<vmem>>, vector<112x16xbf16>
    %19 = vector.extract_strided_slice %14 {offsets = [0, 128], sizes = [16, 128], strides = [1, 1]} : vector<16x256xbf16> to vector<16x128xbf16>
    %cst_13 = arith.constant dense<0.000000e+00> : vector<112x128xf32>
    %20 = tpu.matmul %18, %19, %cst_13 {dimension_numbers = #tpu.dot_dimension_numbers<[1], [0], [0], [1], [0, 0, 1, 1], [], []>} : vector<112x16xbf16>, vector<16x128xbf16>, vector<112x128xf32> -> vector<112x128xf32>
    %21 = arith.addf %17, %20 : vector<112x128xf32>
    %c0_14 = arith.constant 0 : index
    %c0_15 = arith.constant 0 : index
    %22 = vector.load %arg2[%c0_14, %c0_15] : memref<112x5xbf16, #tpu.memory_space<vmem>>, vector<112x5xbf16>
    %c0_16 = arith.constant 0 : index
    %c0_17 = arith.constant 0 : index
    %c0_18 = arith.constant 0 : index
    %23 = vector.load %arg10[%c0_16, %c0_17, %c0_18] : memref<1x5x128xbf16, #tpu.memory_space<vmem>>, vector<1x5x128xbf16>
    %24 = vector.shape_cast %23 : vector<1x5x128xbf16> to vector<5x128xbf16>
    %cst_19 = arith.constant dense<0.000000e+00> : vector<112x128xf32>
    %25 = tpu.matmul %22, %24, %cst_19 {dimension_numbers = #tpu.dot_dimension_numbers<[1], [0], [0], [1], [0, 0, 1, 1], [], []>} : vector<112x5xbf16>, vector<5x128xbf16>, vector<112x128xf32> -> vector<112x128xf32>
    %26 = arith.addf %21, %25 : vector<112x128xf32>
    %27 = vector.broadcast %7 : vector<1x128xf32> to vector<112x128xf32>
    %28 = arith.addf %26, %27 : vector<112x128xf32>
    %29 = arith.negf %28 : vector<112x128xf32>
    %30 = math.exp %29 : vector<112x128xf32>
    %cst_20 = arith.constant 1.000000e+00 : f32
    %31 = vector.broadcast %cst_20 : f32 to vector<112x128xf32>
    %32 = arith.addf %31, %30 : vector<112x128xf32>
    %33 = arith.divf %31, %32 : vector<112x128xf32>
    %34 = arith.mulf %28, %33 : vector<112x128xf32>
    %35 = arith.truncf %34 : vector<112x128xf32> to vector<112x128xbf16>
    %c0_21 = arith.constant 0 : index
    %c0_22 = arith.constant 0 : index
    %c0_23 = arith.constant 0 : index
    %36 = vector.load %arg11[%c0_21, %c0_22, %c0_23] : memref<1x128x128xbf16, #tpu.memory_space<vmem>>, vector<1x128x128xbf16>
    %37 = vector.shape_cast %36 : vector<1x128x128xbf16> to vector<128x128xbf16>
    %cst_24 = arith.constant dense<0.000000e+00> : vector<112x128xf32>
    %38 = tpu.matmul %35, %37, %cst_24 {dimension_numbers = #tpu.dot_dimension_numbers<[1], [0], [0], [1], [0, 0, 1, 1], [], []>} : vector<112x128xbf16>, vector<128x128xbf16>, vector<112x128xf32> -> vector<112x128xf32>
    %39 = vector.broadcast %8 : vector<1x128xf32> to vector<112x128xf32>
    %40 = arith.addf %38, %39 : vector<112x128xf32>
    %41 = arith.negf %40 : vector<112x128xf32>
    %42 = math.exp %41 : vector<112x128xf32>
    %cst_25 = arith.constant 1.000000e+00 : f32
    %43 = vector.broadcast %cst_25 : f32 to vector<112x128xf32>
    %44 = arith.addf %43, %42 : vector<112x128xf32>
    %45 = arith.divf %43, %44 : vector<112x128xf32>
    %46 = arith.mulf %40, %45 : vector<112x128xf32>
    %c0_26 = arith.constant 0 : index
    %c0_27 = arith.constant 0 : index
    %47 = vector.load %arg5[%c0_26, %c0_27] : memref<112x16xbf16, #tpu.memory_space<vmem>>, vector<112x16xbf16>
    %48 = arith.truncf %46 : vector<112x128xf32> to vector<112x128xbf16>
    %cst_28 = arith.constant dense<0.000000e+00> : vector<16x128xf32>
    %49 = tpu.matmul %47, %48, %cst_28 {dimension_numbers = #tpu.dot_dimension_numbers<[0], [0], [1], [1], [0, 1, 1, 1], [], []>} : vector<112x16xbf16>, vector<112x128xbf16>, vector<16x128xf32> -> vector<16x128xf32>
    %50 = arith.truncf %49 : vector<16x128xf32> to vector<16x128xbf16>
    %c0_29 = arith.constant 0 : index
    %c0_30 = arith.constant 0 : index
    %51 = vector.load %arg1[%c0_29, %c0_30] : memref<16x128xbf16, #tpu.memory_space<vmem>>, vector<16x128xbf16>
    %52 = tpu.concatenate %4, %50, %51 in 1 : vector<16x128xbf16>, vector<16x128xbf16>, vector<16x128xbf16> -> vector<16x384xbf16>
    %c0_31 = arith.constant 0 : index
    %c0_32 = arith.constant 0 : index
    %c0_33 = arith.constant 0 : index
    %53 = vector.load %arg12[%c0_31, %c0_32, %c0_33] : memref<1x384x128xbf16, #tpu.memory_space<vmem>>, vector<1x384x128xbf16>
    %54 = vector.shape_cast %53 : vector<1x384x128xbf16> to vector<384x128xbf16>
    %cst_34 = arith.constant dense<0.000000e+00> : vector<16x128xf32>
    %55 = tpu.matmul %52, %54, %cst_34 {dimension_numbers = #tpu.dot_dimension_numbers<[1], [0], [0], [1], [0, 0, 1, 1], [], []>} : vector<16x384xbf16>, vector<384x128xbf16>, vector<16x128xf32> -> vector<16x128xf32>
    %56 = vector.broadcast %9 : vector<1x128xf32> to vector<16x128xf32>
    %57 = arith.addf %55, %56 : vector<16x128xf32>
    %58 = arith.negf %57 : vector<16x128xf32>
    %59 = math.exp %58 : vector<16x128xf32>
    %cst_35 = arith.constant 1.000000e+00 : f32
    %60 = vector.broadcast %cst_35 : f32 to vector<16x128xf32>
    %61 = arith.addf %60, %59 : vector<16x128xf32>
    %62 = arith.divf %60, %61 : vector<16x128xf32>
    %63 = arith.mulf %57, %62 : vector<16x128xf32>
    %64 = arith.truncf %63 : vector<16x128xf32> to vector<16x128xbf16>
    %c0_36 = arith.constant 0 : index
    %c0_37 = arith.constant 0 : index
    %c0_38 = arith.constant 0 : index
    %65 = vector.load %arg13[%c0_36, %c0_37, %c0_38] : memref<1x128x128xbf16, #tpu.memory_space<vmem>>, vector<1x128x128xbf16>
    %66 = vector.shape_cast %65 : vector<1x128x128xbf16> to vector<128x128xbf16>
    %cst_39 = arith.constant dense<0.000000e+00> : vector<16x128xf32>
    %67 = tpu.matmul %64, %66, %cst_39 {dimension_numbers = #tpu.dot_dimension_numbers<[1], [0], [0], [1], [0, 0, 1, 1], [], []>} : vector<16x128xbf16>, vector<128x128xbf16>, vector<16x128xf32> -> vector<16x128xf32>
    %68 = vector.broadcast %10 : vector<1x128xf32> to vector<16x128xf32>
    %69 = arith.addf %67, %68 : vector<16x128xf32>
    %70 = arith.addf %3, %69 : vector<16x128xf32>
    %c0_40 = arith.constant 0 : index
    %c0_41 = arith.constant 0 : index
    %71 = vector.load %arg20[%c0_40, %c0_41] : memref<16x128xf32, #tpu.memory_space<vmem>>, vector<16x128xf32>
    tpu.vector_store %arg20[%c0_40, %c0_41], %70 {strides = array<i32>} : memref<16x128xf32, #tpu.memory_space<vmem>>, vector<16x128xf32>,
    %c3_i32 = arith.constant 3 : i32
    %72 = arith.cmpi eq, %arg0, %c3_i32 : i32
    %73 = arith.extui %72 : i1 to i32
    %c0_i32_42 = arith.constant 0 : i32
    %74 = arith.cmpi ne, %73, %c0_i32_42 : i32
    scf.if %74 {
      %c0_43 = arith.constant 0 : index
      %c0_44 = arith.constant 0 : index
      %75 = vector.load %arg8[%c0_43, %c0_44] : memref<4x128xf32, #tpu.memory_space<vmem>>, vector<4x128xf32>
      %76 = arith.truncf %70 : vector<16x128xf32> to vector<16x128xbf16>
      %c0_45 = arith.constant 0 : index
      %c0_46 = arith.constant 0 : index
      %77 = vector.load %arg15[%c0_45, %c0_46] : memref<128x128xbf16, #tpu.memory_space<vmem>>, vector<128x128xbf16>
      %cst_47 = arith.constant dense<0.000000e+00> : vector<16x128xf32>
      %78 = tpu.matmul %76, %77, %cst_47 {dimension_numbers = #tpu.dot_dimension_numbers<[1], [0], [0], [1], [0, 0, 1, 1], [], []>} : vector<16x128xbf16>, vector<128x128xbf16>, vector<16x128xf32> -> vector<16x128xf32>
      %79 = vector.extract_strided_slice %75 {offsets = [1, 0], sizes = [1, 128], strides = [1, 1]} : vector<4x128xf32> to vector<1x128xf32>
      %80 = vector.broadcast %79 : vector<1x128xf32> to vector<16x128xf32>
      %81 = arith.addf %78, %80 : vector<16x128xf32>
      %82 = arith.negf %81 : vector<16x128xf32>
      %83 = math.exp %82 : vector<16x128xf32>
      %cst_48 = arith.constant 1.000000e+00 : f32
      %84 = vector.broadcast %cst_48 : f32 to vector<16x128xf32>
      %85 = arith.addf %84, %83 : vector<16x128xf32>
      %86 = arith.divf %84, %85 : vector<16x128xf32>
      %87 = arith.mulf %81, %86 : vector<16x128xf32>
      %88 = arith.truncf %87 : vector<16x128xf32> to vector<16x128xbf16>
      %c0_49 = arith.constant 0 : index
      %c0_50 = arith.constant 0 : index
      %89 = vector.load %arg16[%c0_49, %c0_50] : memref<128x128xbf16, #tpu.memory_space<vmem>>, vector<128x128xbf16>
      %cst_51 = arith.constant dense<0.000000e+00> : vector<16x128xf32>
      %90 = tpu.matmul %88, %89, %cst_51 {dimension_numbers = #tpu.dot_dimension_numbers<[1], [0], [0], [1], [0, 0, 1, 1], [], []>} : vector<16x128xbf16>, vector<128x128xbf16>, vector<16x128xf32> -> vector<16x128xf32>
      %91 = vector.extract_strided_slice %75 {offsets = [2, 0], sizes = [1, 128], strides = [1, 1]} : vector<4x128xf32> to vector<1x128xf32>
      %92 = vector.broadcast %91 : vector<1x128xf32> to vector<16x128xf32>
      %93 = arith.addf %90, %92 : vector<16x128xf32>
      %c0_52 = arith.constant 0 : index
      %c0_53 = arith.constant 0 : index
      %94 = vector.load %arg6[%c0_52, %c0_53] : memref<2x16xbf16, #tpu.memory_space<vmem>>, vector<2x16xbf16>
      %95 = arith.truncf %93 : vector<16x128xf32> to vector<16x128xbf16>
      %cst_54 = arith.constant dense<0.000000e+00> : vector<2x128xf32>
      %96 = tpu.matmul %94, %95, %cst_54 {dimension_numbers = #tpu.dot_dimension_numbers<[1], [0], [0], [1], [0, 0, 1, 1], [], []>} : vector<2x16xbf16>, vector<16x128xbf16>, vector<2x128xf32> -> vector<2x128xf32>
      %97 = arith.truncf %96 : vector<2x128xf32> to vector<2x128xbf16>
      %c0_55 = arith.constant 0 : index
      %c0_56 = arith.constant 0 : index
      %98 = vector.load %arg17[%c0_55, %c0_56] : memref<128x128xbf16, #tpu.memory_space<vmem>>, vector<128x128xbf16>
      %cst_57 = arith.constant dense<0.000000e+00> : vector<2x128xf32>
      %99 = tpu.matmul %97, %98, %cst_57 {dimension_numbers = #tpu.dot_dimension_numbers<[1], [0], [0], [1], [0, 0, 1, 1], [], []>} : vector<2x128xbf16>, vector<128x128xbf16>, vector<2x128xf32> -> vector<2x128xf32>
      %100 = vector.extract_strided_slice %75 {offsets = [3, 0], sizes = [1, 128], strides = [1, 1]} : vector<4x128xf32> to vector<1x128xf32>
      %101 = vector.broadcast %100 : vector<1x128xf32> to vector<2x128xf32>
      %102 = arith.addf %99, %101 : vector<2x128xf32>
      %103 = arith.negf %102 : vector<2x128xf32>
      %104 = math.exp %103 : vector<2x128xf32>
      %cst_58 = arith.constant 1.000000e+00 : f32
      %105 = vector.broadcast %cst_58 : f32 to vector<2x128xf32>
      %106 = arith.addf %105, %104 : vector<2x128xf32>
      %107 = arith.divf %105, %106 : vector<2x128xf32>
      %108 = arith.mulf %102, %107 : vector<2x128xf32>
      %109 = arith.truncf %108 : vector<2x128xf32> to vector<2x128xbf16>
      %c0_59 = arith.constant 0 : index
      %c0_60 = arith.constant 0 : index
      %110 = vector.load %arg18[%c0_59, %c0_60] : memref<128x128xbf16, #tpu.memory_space<vmem>>, vector<128x128xbf16>
      %cst_61 = arith.constant dense<0.000000e+00> : vector<2x128xf32>
      %111 = tpu.matmul %109, %110, %cst_61 {dimension_numbers = #tpu.dot_dimension_numbers<[1], [0], [0], [1], [0, 0, 1, 1], [], []>} : vector<2x128xbf16>, vector<128x128xbf16>, vector<2x128xf32> -> vector<2x128xf32>
      %c0_62 = arith.constant 0 : index
      %c0_63 = arith.constant 0 : index
      %112 = vector.load %arg19[%c0_62, %c0_63] : memref<1x128xf32, #tpu.memory_space<vmem>>, vector<1x128xf32>
      %113 = vector.broadcast %112 : vector<1x128xf32> to vector<2x128xf32>
      %114 = arith.addf %111, %113 : vector<2x128xf32>
      %c0_64 = arith.constant 0 : index
      %c0_65 = arith.constant 0 : index
      %115 = vector.load %arg21[%c0_64, %c0_65] : memref<2x128xf32, #tpu.memory_space<vmem>>, vector<2x128xf32>
      tpu.vector_store %arg21[%c0_64, %c0_65], %114 {strides = array<i32>} : memref<2x128xf32, #tpu.memory_space<vmem>>, vector<2x128xf32>,
    } else {
    }
    return
  }
  func.func @transform_0(%arg0: i32) -> (i32, i32) {
    %c0_i32 = arith.constant 0 : i32
    %c0_i32_0 = arith.constant 0 : i32
    %c0_i32_1 = arith.constant 0 : i32
    return %c0_i32, %c0_i32_0 : i32, i32
  }
  func.func @transform_1(%arg0: i32) -> (i32, i32) {
    %c0_i32 = arith.constant 0 : i32
    %c0_i32_0 = arith.constant 0 : i32
    %c0_i32_1 = arith.constant 0 : i32
    return %c0_i32, %c0_i32_0 : i32, i32
  }
  func.func @transform_2(%arg0: i32) -> (i32, i32) {
    %c0_i32 = arith.constant 0 : i32
    %c0_i32_0 = arith.constant 0 : i32
    %c0_i32_1 = arith.constant 0 : i32
    return %c0_i32, %c0_i32_0 : i32, i32
  }
  func.func @transform_3(%arg0: i32) -> (i32, i32) {
    %c0_i32 = arith.constant 0 : i32
    %c0_i32_0 = arith.constant 0 : i32
    %c0_i32_1 = arith.constant 0 : i32
    return %c0_i32, %c0_i32_0 : i32, i32
  }
  func.func @transform_4(%arg0: i32) -> (i32, i32) {
    %c0_i32 = arith.constant 0 : i32
    %c0_i32_0 = arith.constant 0 : i32
    %c0_i32_1 = arith.constant 0 : i32
    return %c0_i32, %c0_i32_0 : i32, i32
  }
  func.func @transform_5(%arg0: i32) -> (i32, i32) {
    %c0_i32 = arith.constant 0 : i32
    %c0_i32_0 = arith.constant 0 : i32
    %c0_i32_1 = arith.constant 0 : i32
    return %c0_i32, %c0_i32_0 : i32, i32
  }
  func.func @transform_6(%arg0: i32) -> (i32, i32) {
    %c0_i32 = arith.constant 0 : i32
    %c0_i32_0 = arith.constant 0 : i32
    %c0_i32_1 = arith.constant 0 : i32
    return %c0_i32, %c0_i32_0 : i32, i32
  }
  func.func @transform_7(%arg0: i32) -> (i32, i32) {
    %c0_i32 = arith.constant 0 : i32
    %c0_i32_0 = arith.constant 0 : i32
    %c0_i32_1 = arith.constant 0 : i32
    return %c0_i32, %c0_i32_0 : i32, i32
  }
  func.func @transform_8(%arg0: i32) -> (i32, i32, i32) {
    %c0_i32 = arith.constant 0 : i32
    %c0_i32_0 = arith.constant 0 : i32
    %c0_i32_1 = arith.constant 0 : i32
    return %arg0, %c0_i32, %c0_i32_0 : i32, i32, i32
  }
  func.func @transform_9(%arg0: i32) -> (i32, i32, i32) {
    %c0_i32 = arith.constant 0 : i32
    %c0_i32_0 = arith.constant 0 : i32
    %c0_i32_1 = arith.constant 0 : i32
    return %arg0, %c0_i32, %c0_i32_0 : i32, i32, i32
  }
  func.func @transform_10(%arg0: i32) -> (i32, i32, i32) {
    %c0_i32 = arith.constant 0 : i32
    %c0_i32_0 = arith.constant 0 : i32
    %c0_i32_1 = arith.constant 0 : i32
    return %arg0, %c0_i32, %c0_i32_0 : i32, i32, i32
  }
  func.func @transform_11(%arg0: i32) -> (i32, i32, i32) {
    %c0_i32 = arith.constant 0 : i32
    %c0_i32_0 = arith.constant 0 : i32
    %c0_i32_1 = arith.constant 0 : i32
    return %arg0, %c0_i32, %c0_i32_0 : i32, i32, i32
  }
  func.func @transform_12(%arg0: i32) -> (i32, i32, i32) {
    %c0_i32 = arith.constant 0 : i32
    %c0_i32_0 = arith.constant 0 : i32
    %c0_i32_1 = arith.constant 0 : i32
    return %arg0, %c0_i32, %c0_i32_0 : i32, i32, i32
  }
  func.func @transform_13(%arg0: i32) -> (i32, i32, i32) {
    %c0_i32 = arith.constant 0 : i32
    %c0_i32_0 = arith.constant 0 : i32
    %c0_i32_1 = arith.constant 0 : i32
    return %arg0, %c0_i32, %c0_i32_0 : i32, i32, i32
  }
  func.func @transform_14(%arg0: i32) -> (i32, i32) {
    %c0_i32 = arith.constant 0 : i32
    %c0_i32_0 = arith.constant 0 : i32
    %c0_i32_1 = arith.constant 0 : i32
    return %c0_i32, %c0_i32_0 : i32, i32
  }
  func.func @transform_15(%arg0: i32) -> (i32, i32) {
    %c0_i32 = arith.constant 0 : i32
    %c0_i32_0 = arith.constant 0 : i32
    %c0_i32_1 = arith.constant 0 : i32
    return %c0_i32, %c0_i32_0 : i32, i32
  }
  func.func @transform_16(%arg0: i32) -> (i32, i32) {
    %c0_i32 = arith.constant 0 : i32
    %c0_i32_0 = arith.constant 0 : i32
    %c0_i32_1 = arith.constant 0 : i32
    return %c0_i32, %c0_i32_0 : i32, i32
  }
  func.func @transform_17(%arg0: i32) -> (i32, i32) {
    %c0_i32 = arith.constant 0 : i32
    %c0_i32_0 = arith.constant 0 : i32
    %c0_i32_1 = arith.constant 0 : i32
    return %c0_i32, %c0_i32_0 : i32, i32
  }
  func.func @transform_18(%arg0: i32) -> (i32, i32) {
    %c0_i32 = arith.constant 0 : i32
    %c0_i32_0 = arith.constant 0 : i32
    %c0_i32_1 = arith.constant 0 : i32
    return %c0_i32, %c0_i32_0 : i32, i32
  }
  func.func @transform_19(%arg0: i32) -> (i32, i32) {
    %c0_i32 = arith.constant 0 : i32
    %c0_i32_0 = arith.constant 0 : i32
    %c0_i32_1 = arith.constant 0 : i32
    return %c0_i32, %c0_i32_0 : i32, i32
  }
  func.func @transform_20(%arg0: i32) -> (i32, i32) {
    %c0_i32 = arith.constant 0 : i32
    %c0_i32_0 = arith.constant 0 : i32
    %c0_i32_1 = arith.constant 0 : i32
    return %c0_i32, %c0_i32_0 : i32, i32
  }
}

</mosaic_0001>

<bundles_post_ra>
// kernel: egnn_forward.1
= control target key start
LH: loop header
LB: loop body
LE: loop exit
PB: predicated region body
PF: predicated region fallthrough
CT: control target
= control target key end

     0   :  { %s5464_s0 = inlined_call_operand.vmem [shape: bf16[16,128], index: 0, kind: input, shape index: {}]   ;;  %s5465_s1 = inlined_call_operand.vmem [shape: bf16[112,5], index: 1, kind: input, shape index: {}]   ;;  %s5466_s2 = inlined_call_operand.vmem [shape: bf16[112,16], index: 2, kind: input, shape index: {}]   ;;  %s5467_s3 = inlined_call_operand.vmem [shape: bf16[112,16], index: 3, kind: input, shape index: {}]   ;;  %s5468_s4 = inlined_call_operand.vmem [shape: bf16[112,16], index: 4, kind: input, shape index: {}]   ;;  %s5469_s5 = inlined_call_operand.vmem [shape: bf16[2,16], index: 5, kind: input, shape index: {}]   ;;  %s5470_s6 = inlined_call_operand.vmem [shape: bf16[128,128], index: 6, kind: input, shape index: {}]   ;;  %s5471_s7 = inlined_call_operand.vmem [shape: f32[4,128], index: 7, kind: input, shape index: {}]   ;;  %s5472_s8 = inlined_call_operand.hbm [shape: bf16[4,128,256], index: 8, kind: input, shape index: {}]   ;;  %s5473_s9 = inlined_call_operand.vmem [shape: bf16[4,5,128], index: 9, kind: input, shape index: {}]   ;;  %s5474_s10 = inlined_call_operand.vmem [shape: bf16[4,128,128], index: 10, kind: input, shape index: {}]   ;;  %s5475_s11 = inlined_call_operand.hbm [shape: bf16[4,384,128], index: 11, kind: input, shape index: {}]   ;;  %s5476_s12 = inlined_call_operand.hbm [shape: bf16[4,128,128], index: 12, kind: input, shape index: {}]   ;;  %s5477_s13 = inlined_call_operand.vmem [shape: f32[4,4,128], index: 13, kind: input, shape index: {}]   ;;  %s5478_s14 = inlined_call_operand.vmem [shape: bf16[128,128], index: 14, kind: input, shape index: {}]   ;;  %s5479_s15 = inlined_call_operand.hbm [shape: bf16[128,128], index: 15, kind: input, shape index: {}]   ;;  %s5480_s16 = inlined_call_operand.hbm [shape: bf16[128,128], index: 16, kind: input, shape index: {}]   ;;  %s5481_s17 = inlined_call_operand.hbm [shape: bf16[128,128], index: 17, kind: input, shape index: {}]   ;;  %s5482_s18 = inlined_call_operand.vmem [shape: f32[1,128], index: 18, kind: input, shape index: {}]   ;;  %s5483_s19 = inlined_call_operand.hbm [shape: f32[16,128], index: 19, kind: output, shape index: {0}]   ;;  %s5484_s20 = inlined_call_operand.vmem [shape: f32[2,128], index: 20, kind: output, shape index: {1}]  }
   0x1   :  { %5502 = sst [smem:[#allocation22_spill]] %s5464_s0 }
   0x2   :  { %5503 = sst [smem:[#allocation23_spill]] %s5465_s1 }
   0x3   :  { %5504 = sst [smem:[#allocation24_spill]] %s5466_s2 }
   0x4   :  { %5505 = sst [smem:[#allocation25_spill]] %s5467_s3 }
   0x5   :  { %5506 = sst [smem:[#allocation26_spill]] %s5468_s4 }
   0x6   :  { %5507 = sst [smem:[#allocation27_spill]] %s5469_s5 }
   0x7   :  { %5508 = sst [smem:[#allocation28_spill]] %s5470_s6 }
   0x8   :  { %5509 = sst [smem:[#allocation29_spill]] %s5471_s7 }
   0x9   :  { %5510 = sst [smem:[#allocation30_spill]] %s5477_s13 }
   0xa   :  { %5511 = sst [smem:[#allocation31_spill]] %s5478_s14 }
   0xb   :  { %5512 = sst [smem:[#allocation32_spill]] %s5482_s18 }
   0xc   :  { %5513 = sst [smem:[#allocation33_spill]] %s5483_s19 }
   0xd   :  { %5514 = sst [smem:[#allocation34_spill]] %s5484_s20 }
   0xe   :  { %26 = vsyncpa [#allocation3], 0 }
   0xf   :  { %28 = vsyncpa [#allocation3 + $0x1], 0 }
  0x10   :  { %29 = vsyncpa [#allocation6], 0 }
  0x11   :  { %31 = vsyncpa [#allocation6 + $0x1], 0 }
  0x12   :  { %32 = vsyncpa [#allocation9], 0 }
  0x13   :  { %33 = vsyncpa [#allocation12], 0 }
  0x14   :  { %34 = vsyncpa [#allocation4], 0  ;;  %s4569_s1 = smov 0   ;;  %s4571_s22 = smov 0  }
  0x15   :  { %s4573_s23 = smov 0   ;;  %s4575_s24 = smov 0  }
  0x16 LB: > { %5515 = sst [smem:[#allocation19_spill]] %s4437_s23  ;;  %s4588_s2 = sadd.s32 4294967295, %s4441_s24   ;;  %s4441_s24 = sphi %s4575_s24, %s5552_s24   ;;  %s4437_s23 = sphi %s4573_s23, %s5554_s23   ;;  %s4433_s22 = sphi %s4571_s22, %s5556_s22   ;;  %s4429_s1 = sphi %s4569_s1, %s5555_s1  }
  0x17   : > { %s4591_s25 = sadd.s32 1, %s4441_s24   ;;  %s215_s26 = sadd.s32 1, %s4437_s23 }
  0x18   : > { %5516 = sst [smem:[#allocation20_spill]] %s4591_s25  ;;  %s212_s3 = ssub.s32 %s4441_s24, %s4591_s25 }
  0x19   : > { %p213_p0 = scmp.eq.s32.totalorder %s212_s3, 0  ;;  %p222_p1 = scmp.ne.s32.totalorder %s4437_s23, %s4433_s22 }
  0x1a   : > { %p223_p2 = scmp.eq.s32.totalorder %s4441_s24, 0  ;;  %p228_p3 = scmp.ne.s32.totalorder %s4433_s22, %s4429_s1 }
  0x1b   : > { %s4601_s27 = scalar_select %p213_p0, %s4437_s23, %s215_s26  }
  0x1c   : > { %p4603_p4 = por %p223_p2, %p222_p1  ;;  %p5489_p5 = scmp.eq.s32.totalorder %s4588_s2, 0 }
  0x1d   : > { %5517 = sst [smem:[#allocation21_spill]] %s4601_s27  ;;  %p3184_p6 = scmp.ge.s32.totalorder %s4441_s24, 1 }
  0x1e   : > { %p516_p7 = scmp.lt.s32.totalorder %s4441_s24, 5  ;;  %p4612_p8 = por %p5489_p5, %p228_p3 }
  0x1f   : > { %s4443_s30 = smov [#allocation8]   ;;  %p3881_p13 = scmp.lt.s32.totalorder %s4441_s24, 4 }
  0x20   : > { %s5519_s4 = scalar_select %p4612_p8, 1, 0 }
  0x21   : > { %p4617_p10 = pnand %p3184_p6, %p516_p7  ;;  %s555_s0 = sshll.u32 %s4443_s30, 4  ;;  %s556_s0 = int_to_ptr.vmem [resolvable:$true] %s555_s0 }
  0x22   : > { %s4631_s1 = sand.u32 1, %s4437_s23   ;;  %s634_s3 = sand.u32 1, %s4441_s24  }
  0x23   : > { %s5520_s29 = scalar_select %p4617_p10, 1, 0 }
  0x24   : > { %p3858_p11 = pneg %p4617_p10  ;;  %p4636_p0 = pnand %p3881_p13, %p4603_p4 }
  0x25   : > { %s4216_s30 = scalar_lea.vmem %s556_s0, 1024  ;;  %p4224_p7 = scmp.lt.s32.totalorder %s556_s0, %s556_s0 }
  0x26   : > { %p4625_p12 = pnand %p3858_p11, %p5489_p5  ;;  %p4217_p2 = scmp.ne.s32.totalorder %s556_s0, %s4216_s30 }
  0x27   : > { %p4225_p11 = scmp.lt.s32.totalorder %s4216_s30, %s4216_s30 }
  0x28   : > { %s5521_s21 = scalar_select %p4625_p12, 1, 0 }
  0x29   : > { %p5495_p1 = pneg %p4625_p12  ;;  %p4226_p9 = por %p4225_p11, %p4224_p7 }
  0x2b   : > { %p4219_p3 = pnand %p4217_p2, %p5495_p1 }
  0x2d   : > { %p4220_p6 = pneg %p4219_p3 }
  0x2f   : > { %p4227_p5 = pnand %p4226_p9, %p4220_p6 }
  0x31   : > { %4230 = shalt.err (!%p4227_p5)
}
  0x32   : > { %s5500_s27 = smov 64   ;;  %s5501_s28 = smov 4  }
  0x33   : > { %3861 = dma.hbm_to_vmem [thread:$0]  (!%p4625_p12), %s5479_s15, 1024, %s556_s0, [#allocation9], %s5500_s27, %s5500_s27, %s5501_s28  }
  0x34   : > { %s3833_s19 = smul.u32 192, %s4631_s1  ;;  %s4446_s30 = smov [#allocation10]  }
  0x35   : > { %s3834_s20 = smul.u32 3072, %s4441_s24  ;;  %s568_s18 = sshll.u32 %s4446_s30, 4  ;;  %s4655_s18 = int_to_ptr.vmem [resolvable:$true] %s568_s18 }
  0x36   : > { %s638_s6 = scalar_lea.vmem [#allocation5], %s3833_s19  ;;  %s4664_s23 = scalar_lea.sflag [#allocation6], %s634_s3 }
  0x37   : > { %s4660_s7 = scalar_lea.hbm %s5475_s11, %s3834_s20  ;;  %s645_s13 = sshll.u32 %s638_s6, 4  ;;  %s4662_s13 = int_to_ptr.vmem [resolvable:$true] %s645_s13 }
  0x38   : > { %s4231_s25 = scalar_lea.hbm %s4660_s7, 3072  ;;  %p4670_p5 = pneg %p4636_p0 }
  0x39   : > { %p4232_p4 = scmp.ne.s32.totalorder %s4660_s7, %s4231_s25  ;;  %s4236_s19 = scalar_lea.hbm %s5475_s11, 12288 }
  0x3a   : > { %p4237_p2 = scmp.lt.s32.totalorder %s4660_s7, %s5475_s11  ;;  %p4238_p3 = scmp.lt.s32.totalorder %s4236_s19, %s4231_s25 }
  0x3b   : > { %p4234_p9 = pnand %p4670_p5, %p4232_p4 }
  0x3c   : > { %p4239_p6 = por %p4238_p3, %p4237_p2 }
  0x3d   : > { %p4235_p13 = pneg %p4234_p9 }
  0x3f   : > { %p4240_p7 = pnand %p4239_p6, %p4235_p13 }
  0x41   : > { %4243 = shalt.err (!%p4240_p7)
}
  0x42   : > { %s4244_s3 = scalar_lea.vmem %s4662_s13, 3072  ;;  %s4447_s30 = smov [#allocation5]  }
  0x43   : > { %p4245_p11 = scmp.ne.s32.totalorder %s4662_s13, %s4244_s3  ;;  %s4249_s5 = sshll.u32 %s4447_s30, 4  ;;  %s4250_s5 = int_to_ptr.vmem [resolvable:$false] %s4249_s5 }
  0x44   : > { %s4251_s14 = scalar_lea.vmem %s4250_s5, 6144  ;;  %p4252_p1 = scmp.lt.s32.totalorder %s4662_s13, %s4250_s5 }
  0x45   : > { %p4247_p4 = pnand %p4245_p11, %p4670_p5  ;;  %p4253_p8 = scmp.lt.s32.totalorder %s4251_s14, %s4244_s3 }
  0x47   : > { %p4248_p9 = pneg %p4247_p4  ;;  %p4254_p10 = por %p4253_p8, %p4252_p1 }
  0x49   : > { %p4255_p12 = pnand %p4254_p10, %p4248_p9 }
  0x4b   : > { %4258 = shalt.err (!%p4255_p12)
}
  0x4c   : > { %3874 = dma.hbm_to_vmem [thread:$0]  (!%p4636_p0), %s4660_s7, 3072, %s4662_s13, %s4664_s23, %s5500_s27, %s5500_s27, %s5501_s28  }
  0x4d   : > { %s4270_s25 = scalar_lea.vmem %s4655_s18, 1024  ;;  %p5524_p2 = scmp.ne.s32.totalorder %s5521_s21, 0 }
  0x4e   : > { %p4271_p13 = scmp.ne.s32.totalorder %s4655_s18, %s4270_s25  ;;  %p4278_p12 = scmp.lt.s32.totalorder %s4655_s18, %s4655_s18 }
  0x4f   : > { %p5525_p3 = pneg %p5524_p2  ;;  %p4279_p1 = scmp.lt.s32.totalorder %s4270_s25, %s4270_s25 }
  0x51   : > { %p4273_p8 = pnand %p4271_p13, %p5525_p3  ;;  %p4280_p6 = por %p4279_p1, %p4278_p12 }
  0x53   : > { %p4274_p10 = pneg %p4273_p8 }
  0x55   : > { %p4281_p7 = pnand %p4280_p6, %p4274_p10 }
  0x57   : > { %4284 = shalt.err (!%p4281_p7)
}
  0x58   : > { %3864 = dma.hbm_to_vmem [thread:$0]  (!%p5524_p2), %s5480_s16, 1024, %s4655_s18, [#allocation9], %s5500_s27, %s5500_s27, %s5501_s28  }
  0x59   : > { %s4448_s13 = smov [#allocation11]   ;;  %s3189_s20 = sshll.u32 %s4631_s1, 7 }
  0x5a   : > { %s581_s6 = sshll.u32 %s4448_s13, 4  ;;  %p5526_p4 = pmov %p5525_p3  ;;  %s582_s6 = int_to_ptr.vmem [resolvable:$true] %s581_s6 }
  0x5b   : > { %s4296_s3 = scalar_lea.vmem %s582_s6, 1024  ;;  %p4304_p3 = scmp.lt.s32.totalorder %s582_s6, %s582_s6 }
  0x5c   : > { %p4297_p11 = scmp.ne.s32.totalorder %s582_s6, %s4296_s3  ;;  %p4305_p8 = scmp.lt.s32.totalorder %s4296_s3, %s4296_s3 }
  0x5e   : > { %p4299_p9 = pnand %p4297_p11, %p5526_p4  ;;  %p4306_p10 = por %p4305_p8, %p4304_p3 }
  0x60   : > { %p4300_p13 = pneg %p4299_p9 }
  0x62   : > { %p4307_p12 = pnand %p4306_p10, %p4300_p13 }
  0x64   : > { %4310 = shalt.err (!%p4307_p12)
}
  0x65   : > { %3867 = dma.hbm_to_vmem [thread:$0]  (!%p5524_p2), %s5481_s17, 1024, %s582_s6, [#allocation12], %s5500_s27, %s5500_s27, %s5501_s28  }
  0x66   : > { %s3396_s5 = sshll.u32 %s4441_s24, 11  ;;  %s602_s21 = scalar_lea.vmem [#allocation2], %s3189_s20 }
  0x67   : > { %s4728_s19 = scalar_lea.hbm %s5472_s8, %s3396_s5  ;;  %s609_s7 = sshll.u32 %s602_s21, 4  ;;  %s4730_s7 = int_to_ptr.vmem [resolvable:$true] %s609_s7 }
  0x68   : > { %s3193_s13 = sshll.u32 %s4631_s1, 6  ;;  %s599_s3 = scalar_lea.sflag [#allocation3], %s4631_s1 }
  0x69   : > { %s4311_s18 = scalar_lea.hbm %s4728_s19, 2048  ;;  %s4316_s14 = scalar_lea.hbm %s5472_s8, 8192 }
  0x6a   : > { %p4312_p1 = scmp.ne.s32.totalorder %s4728_s19, %s4311_s18  ;;  %p4317_p7 = scmp.lt.s32.totalorder %s4728_s19, %s5472_s8 }
  0x6b   : > { %p4318_p11 = scmp.lt.s32.totalorder %s4316_s14, %s4311_s18 }
  0x6c   : > { %p4314_p6 = pnand %p4312_p1, %p4670_p5 }
  0x6d   : > { %p4319_p4 = por %p4318_p11, %p4317_p7 }
  0x6e   : > { %p4315_p2 = pneg %p4314_p6 }
  0x70   : > { %p4320_p9 = pnand %p4319_p4, %p4315_p2 }
  0x72   : > { %4323 = shalt.err (!%p4320_p9)
}
  0x73   : > { %s4324_s20 = scalar_lea.vmem %s4730_s7, 2048  ;;  %s4449_s21 = smov [#allocation2]  }
  0x74   : > { %p4325_p13 = scmp.ne.s32.totalorder %s4730_s7, %s4324_s20  ;;  %s4329_s6 = sshll.u32 %s4449_s21, 4  ;;  %s4330_s6 = int_to_ptr.vmem [resolvable:$false] %s4329_s6 }
  0x75   : > { %s4331_s30 = scalar_lea.vmem %s4330_s6, 4096  ;;  %p4332_p10 = scmp.lt.s32.totalorder %s4730_s7, %s4330_s6 }
  0x76   : > { %p4327_p3 = pnand %p4325_p13, %p4670_p5  ;;  %p4333_p12 = scmp.lt.s32.totalorder %s4331_s30, %s4324_s20 }
  0x78   : > { %p4328_p8 = pneg %p4327_p3  ;;  %p4334_p1 = por %p4333_p12, %p4332_p10 }
  0x7a   : > { %p4335_p6 = pnand %p4334_p1, %p4328_p8 }
  0x7c   : > { %4338 = shalt.err (!%p4335_p6)
}
  0x7d   : > { %s4450_s18 = smov 128   ;;  %s4451_s14 = smov 8  }
  0x7e   : > { %3871 = dma.hbm_to_vmem [thread:$0]  (!%p4636_p0), %s4728_s19, 2048, %s4730_s7, %s599_s3, %s4450_s18, %s4450_s18, %s4451_s14  }
  0x7f   : > { %s3397_s5 = sshll.u32 %s4441_s24, 10  ;;  %s659_s6 = scalar_lea.vmem [#allocation7], %s3193_s13 }
  0x80   : > { %s4760_s20 = scalar_lea.hbm %s5476_s12, %s3397_s5  ;;  %s666_s30 = sshll.u32 %s659_s6, 4  ;;  %s667_s30 = int_to_ptr.vmem [resolvable:$true] %s666_s30 }
  0x81   : > { %s4339_s27 = scalar_lea.hbm %s4760_s20, 1024  ;;  %s4344_s24 = scalar_lea.hbm %s5476_s12, 4096 }
  0x82   : > { %p4340_p2 = scmp.ne.s32.totalorder %s4760_s20, %s4339_s27  ;;  %p4345_p4 = scmp.lt.s32.totalorder %s4760_s20, %s5476_s12 }
  0x83   : > { %p4346_p9 = scmp.lt.s32.totalorder %s4344_s24, %s4339_s27 }
  0x84   : > { %p4342_p7 = pnand %p4340_p2, %p4670_p5 }
  0x85   : > { %p4347_p13 = por %p4346_p9, %p4345_p4 }
  0x86   : > { %p4343_p11 = pneg %p4342_p7 }
  0x88   : > { %p4348_p3 = pnand %p4347_p13, %p4343_p11 }
  0x8a   : > { %4351 = shalt.err (!%p4348_p3)
}
  0x8b   : > { %s4352_s1 = scalar_lea.vmem %s667_s30, 1024  ;;  %s4452_s13 = smov [#allocation7]  }
  0x8c   : > { %p4353_p8 = scmp.ne.s32.totalorder %s667_s30, %s4352_s1  ;;  %s4357_s18 = sshll.u32 %s4452_s13, 4  ;;  %s4358_s18 = int_to_ptr.vmem [resolvable:$false] %s4357_s18 }
  0x8d   : > { %s4359_s14 = scalar_lea.vmem %s4358_s18, 2048  ;;  %p4360_p1 = scmp.lt.s32.totalorder %s667_s30, %s4358_s18 }
  0x8e   : > { %p4355_p10 = pnand %p4353_p8, %p4670_p5  ;;  %p4361_p6 = scmp.lt.s32.totalorder %s4359_s14, %s4352_s1 }
  0x90   : > { %p4356_p12 = pneg %p4355_p10  ;;  %p4362_p2 = por %p4361_p6, %p4360_p1 }
  0x92   : > { %p4363_p7 = pnand %p4362_p2, %p4356_p12 }
  0x94   : > { %4366 = shalt.err (!%p4363_p7)
}
  0x95   : > { %s5527_s27 = smov 4   ;;  %s5528_s28 = smov 64  }
  0x96   : > { %3877 = dma.hbm_to_vmem [thread:$0]  (!%p4636_p0), %s4760_s20, 1024, %s667_s30, %s4664_s23, %s5528_s28, %s5528_s28, %s5527_s27  }
  0x97   : > { %p5529_p5 = scmp.ne.s32.totalorder %s5520_s29, 0 }
  0x98   : > { %s687_s0 = sand.u32 (!%p5529_p5), 1, %s4433_s22   ;;  %p5530_p11 = scmp.ne.s32.totalorder (!%p5529_p5), %s5519_s4, 0 }
  0x99   : > { %685 = sbr.rel (%p5529_p5) target bundleno = 3005 (0xbbd), region = 96  ;;  %s3197_s5 = sshll.u32 (!%p5529_p5), %s687_s0, 7 }
  0x9a   : > { %s688_s25 = scalar_lea.sflag (!%p5529_p5), [#allocation3], %s687_s0  ;;  %s4787_s21 = scalar_lea.vmem (!%p5529_p5), [#allocation2], %s3197_s5 }
  0x9e   : > { %4408 = dma.done.wait (%p5530_p11), %s688_s25, 2048  }
  0x9f   : > { %4410 = vsyncadd (%p5530_p11), %s688_s25, 4294965248  ;;  %s696_s26 = sand.u32 1, %s4588_s2   ;;  %s3835_s6 = smul.u32 192, %s687_s0 }
  0xa0   : > { %s697_s23 = scalar_lea.sflag [#allocation6], %s696_s26 }
  0xa1   : > { %s4794_s20 = scalar_lea.vmem [#allocation5], %s3835_s6 }
  0xa2   : > { %4412 = dma.done.wait (%p5530_p11), %s697_s23, 4096  }
  0xa3   : > { %4414 = vsyncadd (%p5530_p11), %s697_s23, 4294963200  ;;  %s3198_s29 = sshll.u32 %s687_s0, 6  ;;  %p5531_p0 = scmp.eq.s32.totalorder %s4588_s2, 0 }
  0xa4   : > { %s4800_s30 = scalar_lea.vmem [#allocation7], %s3198_s29 }
  0xa5   : > { %4416 = dma.done.wait (%p5531_p0), [#allocation9], 2048   ;;  %p5532_p4 = pmov %p5531_p0 }
  0xa6   : > { %p5533_p9 = pmov %p5531_p0 }
  0xa7   : > { %4418 = vsyncadd (%p5532_p4), [#allocation9], 4294965248 }
  0xa8   : > { %4420 = dma.done.wait (%p5533_p9), [#allocation12], 1024   ;;  %p5534_p13 = pmov %p5531_p0 }
  0xa9   : > { %p796_p3 = scmp.lt.s32.totalorder %s4588_s2, 3  ;;  %s5535_s0 = sld [smem:[#allocation30_spill]] }
  0xaa   : > { %4422 = vsyncadd (%p5534_p13), [#allocation12], 4294966272  ;;  %p5536_p8 = scmp.ne.s32.totalorder %s4588_s2, 0 }
  0xab   : > { %s797_s4 = scalar_select %p796_p3, %s4588_s2, 3 }
  0xac   : > { %813 = sbr.rel (%p5536_p8) target bundleno = 410 (0x19a), region = 124  ;;  %s5537_s6 = sld [smem:[#allocation28_spill]] (!%p5536_p8) }
  0xad   : > { %s3202_s19 = sshll.u32 %s797_s4, 2  ;;  %s3398_s24 = sshll.u32 %s797_s4, 6 }
  0xae   : > { %s4815_s1 = scalar_lea.vmem %s5473_s9, %s3202_s19  ;;  %s4820_s14 = scalar_lea.vmem %s5474_s10, %s3398_s24 }
  0xaf   : > { %s4825_s5 = scalar_lea.vmem %s5535_s0, %s3202_s19  ;;  %s5538_s4 = sld [smem:[#allocation22_spill]] (!%p5536_p8) }
  0xb0   : > { %s5539_s7 = sld [smem:[#allocation29_spill]] (!%p5536_p8) }
  0xb1   : > { %v4453_v1 = vmov 0.0   ;;  %vm4454_vm0 = vmmov 0  }
  0xb2   : > { %v3937_v0 = vld [vmem:[%s5537_s6 + $0x38] sm:$0xff]   ;;  %3533 = vmatprep.subr.bf16.mxu0 %v4453_v1  ;;  %v3938_v2 = vld [vmem:[%s5537_s6 + $0x30] sm:$0xff]   ;;  %3549 = vmatprep.mubr.msk.bf16.mxu0 %vm4454_vm0, %v4453_v1  ;;  %v3939_v3 = vld [vmem:[%s5537_s6 + $0x28] sm:$0xff]  }
  0xb3   : > { %3534 = vmatpush3.bf16.msra.mxu0 %v3937_v0  ;;  %v3940_v4 = vld [vmem:[%s5537_s6 + $0x20] sm:$0xff]   ;;  %v3941_v5 = vld [vmem:[%s5537_s6 + $0x18] sm:$0xff]   ;;  %v3942_v6 = vld [vmem:[%s5537_s6 + $0x10] sm:$0xff]  }
  0xb4   : > { %3535 = vmatprep.subr.bf16.mxu0 %v4453_v1  ;;  %v3943_v7 = vld [vmem:[%s5537_s6 + $0x8] sm:$0xff]   ;;  %v3944_v8 = vld [vmem:[%s5537_s6] sm:$0xff]  }
  0xb5   : > { %v3945_v9 = vld [vmem:[%s5538_s4] sm:$0xff]  }
  0xb6   : > { %v3207_v10 = vld [vmem:[%s5539_s7] ss:$0 sm:$0xff] }
  0xb7   : > { %3536 = vmatpush3.bf16.msra.mxu0 %v3938_v2 }
  0xb8   : > { %3537 = vmatprep.subr.bf16.mxu0 %v4453_v1 }
  0xbb   : > { %3538 = vmatpush3.bf16.msra.mxu0 %v3939_v3 }
  0xbc   : > { %3539 = vmatprep.subr.bf16.mxu0 %v4453_v1 }
  0xbf   : > { %3540 = vmatpush3.bf16.msra.mxu0 %v3940_v4 }
  0xc0   : > { %3541 = vmatprep.subr.bf16.mxu0 %v4453_v1 }
  0xc3   : > { %3542 = vmatpush3.bf16.msra.mxu0 %v3941_v5 }
  0xc4   : > { %3543 = vmatprep.subr.bf16.mxu0 %v4453_v1 }
  0xc7   : > { %3544 = vmatpush3.bf16.msra.mxu0 %v3942_v6 }
  0xc8   : > { %3545 = vmatprep.subr.bf16.mxu0 %v4453_v1 }
  0xcb   : > { %3546 = vmatpush3.bf16.msra.mxu0 %v3943_v7 }
  0xcc   : > { %3547 = vmatprep.subr.bf16.mxu0 %v4453_v1 }
  0xcf   : > { %3548 = vmatpush3.bf16.msra.mxu0 %v3944_v8 }
  0xd2   : > { %3550 = vmatmul.mubr.bf16.vlgmr.msra.gmra.mxu0 %v3945_v9 }
 0x192   : > { %v925_v11 = vpop.f32.mrf.mxu0 }
 0x193   : > { %v926_v12 = vadd.f32 %v3207_v10, %v925_v11 }
 0x194   : > { %v3551_v13 = vpop.f32.mrf.mxu0 }
 0x195   : > { %932 = vst [vmem:[#allocation13] sm:$0xff] %v926_v12 }
 0x196   : > { %v928_v14 = vpop.f32.mrf.mxu0 }
 0x197   : > { %v929_v15 = vadd.f32 %v3207_v10, %v928_v14 }
 0x198   : > { %v3552_v16 = vpop.f32.mrf.mxu0 }
 0x199   : > { %933 = vst [vmem:[#allocation13 + $0x8] sm:$0xff] %v929_v15 }
 0x19a PF: > { %v3946_v17 = vld [vmem:[%s4787_s21 + $0x74] ss:$8 sps:$4 sm:$0xff]   ;;  %v3948_v18 = vld [vmem:[%s4787_s21 + $0x70] ss:$8 sps:$4 sm:$0xff]   ;;  %v4455_v19 = vmov 0   ;;  %v4456_v37 = vmov 0.0  }
 0x19b   : > { %1066 = vmatprep.mubr.bf16.mxu0 %v4455_v19  ;;  %1034 = vmatprep.subr.bf16.mxu0 %v3946_v17  ;;  %v3949_v20 = vld [vmem:[%s4787_s21 + $0x64] ss:$8 sps:$4 sm:$0xff]   ;;  %v3951_v21 = vld [vmem:[%s4787_s21 + $0x60] ss:$8 sps:$4 sm:$0xff]   ;;  %v3952_v22 = vld [vmem:[%s4787_s21 + $0x54] ss:$8 sps:$4 sm:$0xff]  }
 0x19c   : > { %1035 = vmatpush1.bf16.msra.mxu0 %v3948_v18  ;;  %v3954_v23 = vld [vmem:[%s4787_s21 + $0x50] ss:$8 sps:$4 sm:$0xff]   ;;  %v3955_v24 = vld [vmem:[%s4787_s21 + $0x44] ss:$8 sps:$4 sm:$0xff]   ;;  %v3957_v25 = vld [vmem:[%s4787_s21 + $0x40] ss:$8 sps:$4 sm:$0xff]   ;;  %3831 = vmatprep.subr.bf16.mxu1 %v4456_v37 }
 0x19d   : > { %1036 = vmatprep.subr.bf16.mxu0 %v3949_v20  ;;  %v3958_v26 = vld [vmem:[%s4787_s21 + $0x34] ss:$8 sps:$4 sm:$0xff]   ;;  %v3960_v27 = vld [vmem:[%s4787_s21 + $0x30] ss:$8 sps:$4 sm:$0xff]   ;;  %v3961_v28 = vld [vmem:[%s4787_s21 + $0x24] ss:$8 sps:$4 sm:$0xff]  }
 0x19e   : > { %v3963_v29 = vld [vmem:[%s4787_s21 + $0x20] ss:$8 sps:$4 sm:$0xff]   ;;  %v3964_v30 = vld [vmem:[%s4787_s21 + $0x14] ss:$8 sps:$4 sm:$0xff]   ;;  %v3966_v31 = vld [vmem:[%s4787_s21 + $0x10] ss:$8 sps:$4 sm:$0xff]  }
 0x19f   : > { %v3967_v32 = vld [vmem:[%s4787_s21 + $0x4] ss:$8 sps:$4 sm:$0xff]   ;;  %v3969_v33 = vld [vmem:[%s4787_s21] ss:$8 sps:$4 sm:$0xff]   ;;  %vm4457_vm1 = vmmov 0   ;;  %vm1470_vm2 = vcmask 1041408  }
 0x1a0   : > { %1037 = vmatpush1.bf16.msra.mxu0 %v3951_v21  ;;  %v934_v34 = vld [vmem:[#allocation13] sm:$0xff]  ;;  %v935_v35 = vld [vmem:[#allocation13 + $0x8] sm:$0xff]  ;;  %3559 = vmatprep.mubr.msk.bf16.mxu1 %vm4457_vm1, %v4456_v37  ;;  %vm1471_vm3 = vcmask 1042432   ;;  %v4458_v41 = vmov 65535   ;;  %s5540_s13 = sld [smem:[#allocation25_spill]]  ;;  %vm1142_vm4 = vcmask 130048  }
 0x1a1   : > { %1038 = vmatprep.subr.bf16.mxu0 %v3952_v22  ;;  %v4875_v36 = vpack.c.bf16 %v935_v35, %v934_v34  ;;  %v1472_v42 = vsel %vm1470_vm2, 4294967295, %v4458_v41  ;;  %v1412_v45 = vld [vmem:[%s4815_s1] sm:$0x7]  ;;  %s5541_s26 = sld [smem:[#allocation24_spill]]  ;;  %vm1448_vm5 = vcmask 39936   ;;  %v3991_v6 = vld [vmem:[%s4820_s14 + $0x38] sm:$0xff]  }
 0x1a2   : > { %v1473_v46 = vsel %vm1471_vm3, %v1472_v42, 0  ;;  %s5542_s21 = sld [smem:[#allocation23_spill]]  ;;  %v3992_v7 = vld [vmem:[%s4820_s14 + $0x30] sm:$0xff]   ;;  %v3993_v8 = vld [vmem:[%s4820_s14 + $0x28] sm:$0xff]   ;;  %v3994_v9 = vld [vmem:[%s4820_s14 + $0x20] sm:$0xff]   ;;  %vm2037_vm6 = vcmask 916480  }
 0x1a3   : > { %v1475_v49 = vand.u32 %v1473_v46, %v1412_v45  ;;  %v3995_v10 = vld [vmem:[%s4820_s14 + $0x18] sm:$0xff]   ;;  %v3996_v11 = vld [vmem:[%s4820_s14 + $0x10] sm:$0xff]   ;;  %v3997_v12 = vld [vmem:[%s4820_s14 + $0x8] sm:$0xff]   ;;  %s5543_s18 = sld [smem:[#allocation26_spill]]  ;;  %p3354_p10 = scmp.ne.s32.totalorder %s4588_s2, 3 }
 0x1a4   : > { %1039 = vmatpush1.bf16.msra.mxu0 %v3954_v23  ;;  %v3998_v13 = vld [vmem:[%s4820_s14] sm:$0xff]   ;;  %s5544_s27 = sld [smem:[#allocation22_spill]] }
 0x1a5   : > { %1040 = vmatprep.subr.bf16.mxu0 %v3955_v24  ;;  %s5545_s1 = sld [smem:[#allocation31_spill]] (!%p3354_p10) }
 0x1a6   : > { %v3970_v47 = vld [vmem:[%s5540_s13] sm:$0xff]   ;;  %v3971_v48 = vld [vmem:[%s5540_s13 + $0x8] sm:$0xff]   ;;  %v3972_v51 = vld [vmem:[%s5540_s13 + $0x10] sm:$0xff]   ;;  %s5547_s25 = sld [smem:[#allocation29_spill]] (!%p3354_p10) }
 0x1a7   : > { %v3973_v52 = vld [vmem:[%s5541_s26] sm:$0xff]   ;;  %v3974_v53 = vld [vmem:[%s5540_s13 + $0x18] sm:$0xff]   ;;  %v3975_v54 = vld [vmem:[%s5541_s26 + $0x8] sm:$0xff]   ;;  %s5548_s4 = sld [smem:[#allocation27_spill]] (!%p3354_p10) }
 0x1a8   : > { %1041 = vmatpush1.bf16.msra.mxu0 %v3957_v25  ;;  %v3976_v55 = vld [vmem:[%s5540_s13 + $0x20] sm:$0xff]   ;;  %v3977_v56 = vld [vmem:[%s5541_s26 + $0x10] sm:$0xff]   ;;  %v3978_v57 = vld [vmem:[%s5540_s13 + $0x28] sm:$0xff]   ;;  %s5549_s7 = sld [smem:[#allocation32_spill]] (!%p3354_p10) }
 0x1a9   : > { %1042 = vmatprep.subr.bf16.mxu0 %v3958_v26  ;;  %v3979_v58 = vld [vmem:[%s5541_s26 + $0x18] sm:$0xff]   ;;  %v3980_v59 = vld [vmem:[%s5540_s13 + $0x30] sm:$0xff]   ;;  %v3981_v60 = vld [vmem:[%s5541_s26 + $0x20] sm:$0xff]  }
 0x1aa   : > { %v3982_v61 = vld [vmem:[%s5541_s26 + $0x28] sm:$0xff]   ;;  %v3983_v62 = vld [vmem:[%s5542_s21] sm:$0xff]   ;;  %v3984_v63 = vld [vmem:[%s5541_s26 + $0x30] sm:$0xff]  }
 0x1ab   : > { %v3985_v0 = vld [vmem:[%s5542_s21 + $0x8] sm:$0xff]   ;;  %v3986_v1 = vld [vmem:[%s5542_s21 + $0x10] sm:$0xff]   ;;  %v3987_v2 = vld [vmem:[%s5542_s21 + $0x18] sm:$0xff]   ;;  %s5546_s28 = smov (!%p3354_p10), %s5545_s1 }
 0x1ac   : > { %1043 = vmatpush1.bf16.msra.mxu0 %v3960_v27  ;;  %v3988_v3 = vld [vmem:[%s5542_s21 + $0x20] sm:$0xff]   ;;  %v3989_v4 = vld [vmem:[%s5542_s21 + $0x28] sm:$0xff]   ;;  %v3990_v5 = vld [vmem:[%s5542_s21 + $0x30] sm:$0xff]  }
 0x1ad   : > { %1044 = vmatprep.subr.bf16.mxu0 %v3961_v28 }
 0x1b0   : > { %1045 = vmatpush1.bf16.msra.mxu0 %v3963_v29 }
 0x1b1   : > { %1046 = vmatprep.subr.bf16.mxu0 %v3964_v30 }
 0x1b4   : > { %1047 = vmatpush1.bf16.msra.mxu0 %v3966_v31 }
 0x1b5   : > { %1048 = vmatprep.subr.bf16.mxu0 %v3967_v32 }
 0x1b8   : > { %1049 = vmatpush1.bf16.msra.mxu0 %v3969_v33 }
 0x1b9   : > { %3553 = vmatprep.subr.bf16.mxu0 %v4456_v37 }
 0x1bb   : > { %1067 = vmatmul.mubr.bf16.vlgmr.msra.gmra.mxu0 %v4875_v36 }
 0x1bc   : > { %3555 = vmatprep.mubr.msk.bf16.mxu0 %vm4457_vm1, %v4456_v37 }
 0x27b   : > { %v1068_v38 = vpop.f32.mrf.mxu0 }
 0x27d   : > { %v1070_v39 = vpop.f32.mrf.mxu0 }
 0x27f   : > { %v1072_v40 = vpop.f32.mrf.mxu0 }
 0x280   : > { %v1077_v50 = vpack.c.bf16 %v1072_v40, %v1068_v38 }
 0x281   : > { %v1074_v43 = vpop.f32.mrf.mxu0 }
 0x282   : > { %v1078_v44 = vpack.c.bf16 %v1074_v43, %v1070_v39 }
 0x284   : > { %3554 = vmatpush3.bf16.msra.mxu0 %v1078_v44  ;;  %3832 = vmatpush3.bf16.msra.mxu1 %v1078_v44 }
 0x285   : > { %3583 = vmatprep.subr.bf16.mxu0 %v4456_v37  ;;  %3613 = vmatprep.subr.bf16.mxu1 %v4456_v37 }
 0x287   : > { %3556 = vmatmul.mubr.msk.bf16.vlgmr.msra.gmra.mxu0 %vm1142_vm4, %v3970_v47  ;;  %3560 = vmatmul.mubr.msk.bf16.vlgmr.msra.gmra.mxu1 %vm1142_vm4, %v3971_v48 }
 0x288   : > { %3584 = vmatpush3.bf16.msra.mxu0 %v1077_v50  ;;  %3563 = vmatprep.mubr.msk.bf16.mxu1 %vm4457_vm1, %v4456_v37 }
 0x289   : > { %3585 = vmatprep.mubr.msk.bf16.mxu0 %vm4457_vm1, %v4456_v37  ;;  %3614 = vmatpush3.bf16.msra.mxu1 %v1475_v49 }
 0x28a   : > { %3643 = vmatprep.subr.bf16.mxu0 %v4456_v37  ;;  %3687 = vmatprep.subr.bf16.mxu1 %v4456_v37 }
 0x28f   : > { %3564 = vmatmul.mubr.msk.bf16.gmra.mxu1 %vm1142_vm4, %v3972_v51  ;;  %3586 = vmatmul.mubr.msk.bf16.vlgmr.msra.gmra.mxu0 %vm1142_vm4, %v3973_v52  ;;  %v1580_v52 = vlaneseq }
 0x290   : > { %3567 = vmatprep.mubr.msk.bf16.mxu1 %vm4457_vm1, %v4456_v37  ;;  %3589 = vmatprep.mubr.msk.bf16.mxu0 %vm4457_vm1, %v4456_v37 }
 0x291   : > { %3644 = vmatpush3.bf16.msra.mxu0 %v3991_v6 }
 0x292   : > { %3645 = vmatprep.subr.bf16.mxu0 %v4456_v37 }
 0x295   : > { %3646 = vmatpush3.bf16.msra.mxu0 %v3992_v7 }
 0x296   : > { %3647 = vmatprep.subr.bf16.mxu0 %v4456_v37 }
 0x297   : > { %3568 = vmatmul.mubr.msk.bf16.gmra.mxu1 %vm1142_vm4, %v3974_v53  ;;  %3590 = vmatmul.mubr.msk.bf16.gmra.mxu0 %vm1142_vm4, %v3975_v54 }
 0x298   : > { %3571 = vmatprep.mubr.msk.bf16.mxu1 %vm4457_vm1, %v4456_v37  ;;  %3593 = vmatprep.mubr.msk.bf16.mxu0 %vm4457_vm1, %v4456_v37 }
 0x299   : > { %3648 = vmatpush3.bf16.msra.mxu0 %v3993_v8 }
 0x29a   : > { %3649 = vmatprep.subr.bf16.mxu0 %v4456_v37 }
 0x29d   : > { %3650 = vmatpush3.bf16.msra.mxu0 %v3994_v9 }
 0x29e   : > { %3651 = vmatprep.subr.bf16.mxu0 %v4456_v37 }
 0x29f   : > { %3572 = vmatmul.mubr.msk.bf16.gmra.mxu1 %vm1142_vm4, %v3976_v55  ;;  %3594 = vmatmul.mubr.msk.bf16.gmra.mxu0 %vm1142_vm4, %v3977_v56 }
 0x2a0   : > { %3575 = vmatprep.mubr.msk.bf16.mxu1 %vm4457_vm1, %v4456_v37  ;;  %3597 = vmatprep.mubr.msk.bf16.mxu0 %vm4457_vm1, %v4456_v37 }
 0x2a1   : > { %3652 = vmatpush3.bf16.msra.mxu0 %v3995_v10 }
 0x2a2   : > { %3653 = vmatprep.subr.bf16.mxu0 %v4456_v37 }
 0x2a5   : > { %3654 = vmatpush3.bf16.msra.mxu0 %v3996_v11 }
 0x2a6   : > { %3655 = vmatprep.subr.bf16.mxu0 %v4456_v37 }
 0x2a7   : > { %3576 = vmatmul.mubr.msk.bf16.gmra.mxu1 %vm1142_vm4, %v3978_v57  ;;  %3598 = vmatmul.mubr.msk.bf16.gmra.mxu0 %vm1142_vm4, %v3979_v58  ;;  %v5057_v57 = vshrl.u32 %v1580_v52, 7 }
 0x2a8   : > { %3579 = vmatprep.mubr.msk.bf16.mxu1 %vm4457_vm1, %v4456_v37  ;;  %3601 = vmatprep.mubr.msk.bf16.mxu0 %vm4457_vm1, %v4456_v37 }
 0x2a9   : > { %3656 = vmatpush3.bf16.msra.mxu0 %v3997_v12 }
 0x2aa   : > { %3657 = vmatprep.subr.bf16.mxu0 %v4456_v37 }
 0x2ad   : > { %3658 = vmatpush3.bf16.msra.mxu0 %v3998_v13 }
 0x2ae   : > { %3705 = vmatprep.subr.bf16.mxu0 %v4456_v37 }
 0x2af   : > { %3580 = vmatmul.mubr.msk.bf16.gmra.mxu1 %vm1142_vm4, %v3980_v59  ;;  %3602 = vmatmul.mubr.msk.bf16.gmra.mxu0 %vm1142_vm4, %v3981_v60 }
 0x2b0   : > { %3605 = vmatprep.mubr.msk.bf16.mxu0 %vm4457_vm1, %v4456_v37  ;;  %3615 = vmatprep.mubr.msk.bf16.mxu1 %vm4457_vm1, %v4456_v37 }
 0x2b7   : > { %3606 = vmatmul.mubr.msk.bf16.gmra.mxu0 %vm1142_vm4, %v3982_v61  ;;  %3616 = vmatmul.mubr.msk.bf16.vlgmr.msra.gmra.mxu1 %vm1448_vm5, %v3983_v62  ;;  %v1582_v62 = vsub.s32 0, %v5057_v57 }
 0x2b8   : > { %3609 = vmatprep.mubr.msk.bf16.mxu0 %vm4457_vm1, %v4456_v37  ;;  %3619 = vmatprep.mubr.msk.bf16.mxu1 %vm4457_vm1, %v4456_v37 }
 0x2bf   : > { %3610 = vmatmul.mubr.msk.bf16.gmra.mxu0 %vm1142_vm4, %v3984_v63  ;;  %3620 = vmatmul.mubr.msk.bf16.gmra.mxu1 %vm1448_vm5, %v3985_v0 }
 0x2c0   : > { %3623 = vmatprep.mubr.msk.bf16.mxu1 %vm4457_vm1, %v4456_v37  ;;  %3659 = vmatprep.mubr.msk.bf16.mxu0 %vm4457_vm1, %v4456_v37 }
 0x2c7   : > { %3624 = vmatmul.mubr.msk.bf16.gmra.mxu1 %vm1448_vm5, %v3986_v1  ;;  %v5069_v1 = vld [vmem:[%s4825_s5] sm:$0xf]  ;;  %s5550_s5 = sld [smem:[#allocation34_spill]] (!%p3354_p10) }
 0x2c8   : > { %3627 = vmatprep.mubr.msk.bf16.mxu1 %vm4457_vm1, %v4456_v37 }
 0x2cf   : > { %3628 = vmatmul.mubr.msk.bf16.gmra.mxu1 %vm1448_vm5, %v3987_v2 }
 0x2d0   : > { %3631 = vmatprep.mubr.msk.bf16.mxu1 %vm4457_vm1, %v4456_v37 }
 0x2d7   : > { %3632 = vmatmul.mubr.msk.bf16.gmra.mxu1 %vm1448_vm5, %v3988_v3 }
 0x2d8   : > { %3635 = vmatprep.mubr.msk.bf16.mxu1 %vm4457_vm1, %v4456_v37 }
 0x2df   : > { %3636 = vmatmul.mubr.msk.bf16.gmra.mxu1 %vm1448_vm5, %v3989_v4 }
 0x2e0   : > { %3639 = vmatprep.mubr.msk.bf16.mxu1 %vm4457_vm1, %v4456_v37 }
 0x2e7   : > { %3640 = vmatmul.mubr.msk.bf16.gmra.mxu1 %vm1448_vm5, %v3990_v5  ;;  %v5072_v5 = vrot.slane %v5069_v1, %v1582_v62 }
 0x2e8   : > { %3701 = vmatprep.mubr.msk.bf16.mxu1 %vm4457_vm1, %v4456_v37 }
 0x347   : > { %v1198_v14 = vpop.f32.mrf.mxu0  ;;  %v5031_v15 = vpop.f32.mrf.mxu1 }
 0x349   : > { %v3557_v16 = vpop.f32.mrf.mxu0  ;;  %v3561_v17 = vpop.f32.mrf.mxu1 }
 0x34b   : > { %v1201_v18 = vpop.f32.mrf.mxu0  ;;  %v5033_v19 = vpop.f32.mrf.mxu1 }
 0x34d   : > { %v3558_v20 = vpop.f32.mrf.mxu0  ;;  %v3562_v21 = vpop.f32.mrf.mxu1 }
 0x34f   : > { %v5035_v22 = vpop.f32.mrf.mxu1  ;;  %v1343_v23 = vpop.f32.mrf.mxu0 }
 0x350   : > { %v1344_v4 = vadd.f32 %v1343_v23, %v1198_v14 }
 0x351   : > { %v3565_v24 = vpop.f32.mrf.mxu1  ;;  %v3587_v25 = vpop.f32.mrf.mxu0 }
 0x353   : > { %v5037_v26 = vpop.f32.mrf.mxu1  ;;  %v1346_v27 = vpop.f32.mrf.mxu0 }
 0x354   : > { %v1347_v11 = vadd.f32 %v1346_v27, %v1201_v18 }
 0x355   : > { %v3566_v28 = vpop.f32.mrf.mxu1  ;;  %v3588_v29 = vpop.f32.mrf.mxu0 }
 0x357   : > { %v5039_v30 = vpop.f32.mrf.mxu1  ;;  %v1351_v31 = vpop.f32.mrf.mxu0 }
 0x358   : > { %v1352_v23 = vadd.f32 %v1351_v31, %v5031_v15 }
 0x359   : > { %v3569_v32 = vpop.f32.mrf.mxu1  ;;  %v3591_v33 = vpop.f32.mrf.mxu0 }
 0x35b   : > { %v5041_v34 = vpop.f32.mrf.mxu1  ;;  %v1354_v35 = vpop.f32.mrf.mxu0 }
 0x35c   : > { %v1355_v33 = vadd.f32 %v1354_v35, %v5033_v19 }
 0x35d   : > { %v3570_v38 = vpop.f32.mrf.mxu1  ;;  %v3592_v39 = vpop.f32.mrf.mxu0 }
 0x35f   : > { %v5043_v40 = vpop.f32.mrf.mxu1  ;;  %v1359_v41 = vpop.f32.mrf.mxu0 }
 0x361   : > { %v3573_v42 = vpop.f32.mrf.mxu1  ;;  %v3595_v43 = vpop.f32.mrf.mxu0 }
 0x363   : > { %v5045_v44 = vpop.f32.mrf.mxu1  ;;  %v5047_v45 = vpop.f32.mrf.mxu0 }
 0x365   : > { %v3574_v46 = vpop.f32.mrf.mxu1  ;;  %v3596_v47 = vpop.f32.mrf.mxu0 }
 0x366   : > { %v1360_v47 = vadd.f32 %v1359_v41, %v5035_v22 }
 0x367   : > { %v5049_v48 = vpop.f32.mrf.mxu1  ;;  %v5051_v49 = vpop.f32.mrf.mxu0 }
 0x369   : > { %v3577_v50 = vpop.f32.mrf.mxu1  ;;  %v3599_v51 = vpop.f32.mrf.mxu0 }
 0x36b   : > { %v5053_v53 = vpop.f32.mrf.mxu1  ;;  %v5055_v54 = vpop.f32.mrf.mxu0 }
 0x36d   : > { %v3578_v55 = vpop.f32.mrf.mxu1  ;;  %v3600_v56 = vpop.f32.mrf.mxu0 }
 0x36e   : > { %v1363_v55 = vadd.f32 %v5047_v45, %v5037_v26 }
 0x36f   : > { %v5059_v58 = vpop.f32.mrf.mxu1  ;;  %v5061_v59 = vpop.f32.mrf.mxu0 }
 0x371   : > { %v3581_v60 = vpop.f32.mrf.mxu1  ;;  %v3603_v61 = vpop.f32.mrf.mxu0 }
 0x373   : > { %v5064_v63 = vpop.f32.mrf.mxu1  ;;  %v5066_v0 = vpop.f32.mrf.mxu0 }
 0x375   : > { %v3582_v2 = vpop.f32.mrf.mxu1  ;;  %v3604_v3 = vpop.f32.mrf.mxu0 }
 0x376   : > { %v1368_v3 = vadd.f32 %v5051_v49, %v5039_v30 }
 0x377   : > { %v5074_v6 = vpop.f32.mrf.mxu0  ;;  %v1511_v7 = vpop.f32.mrf.mxu1 }
 0x378   : > { %v1566_v8 = vadd.f32 %v1511_v7, %v1344_v4 }
 0x379   : > { %v3607_v9 = vpop.f32.mrf.mxu0  ;;  %v3617_v10 = vpop.f32.mrf.mxu1 }
 0x37a   : > { %v5077_v12 = vadd.f32 %v5072_v5, %v1566_v8 }
 0x37b   : > { %v5079_v13 = vpop.f32.mrf.mxu0  ;;  %v1514_v16 = vpop.f32.mrf.mxu1 }
 0x37c   : > { %v3275_v17 = vmul.f32 -1.442695, %v5077_v12  ;;  %v1567_v20 = vadd.f32 %v1514_v16, %v1347_v11  ;;  %v1371_v11 = vadd.f32 %v5055_v54, %v5041_v34 }
 0x37d   : > { %v3608_v14 = vpop.f32.mrf.mxu0  ;;  %v3618_v21 = vpop.f32.mrf.mxu1 }
 0x37e   : > { %4039 = vpow2.f32 %v3275_v17  ;;  %v5084_v24 = vadd.f32 %v5072_v5, %v1567_v20 }
 0x37f   : > { %v5086_v25 = vpop.f32.mrf.mxu0  ;;  %v1519_v18 = vpop.f32.mrf.mxu1 }
 0x380   : > { %v3276_v27 = vmul.f32 -1.442695, %v5084_v24  ;;  %v1568_v28 = vadd.f32 %v1519_v18, %v1352_v23  ;;  %v1376_v23 = vadd.f32 %v5061_v59, %v5043_v40 }
 0x381   : > { %v3611_v29 = vpop.f32.mrf.mxu0  ;;  %v3621_v32 = vpop.f32.mrf.mxu1 }
 0x382   : > { %4041 = vpow2.f32 %v3276_v27  ;;  %v5091_v38 = vadd.f32 %v5072_v5, %v1568_v28 }
 0x383   : > { %v5093_v39 = vpop.f32.mrf.mxu0  ;;  %v1522_v15 = vpop.f32.mrf.mxu1 }
 0x384   : > { %v3277_v31 = vmul.f32 -1.442695, %v5091_v38  ;;  %v1569_v42 = vadd.f32 %v1522_v15, %v1355_v33  ;;  %v1379_v33 = vadd.f32 %v5066_v0, %v5045_v44 }
 0x385   : > { %v3622_v43 = vpop.f32.mrf.mxu1  ;;  %v3612_v46 = vpop.f32.mrf.mxu0 }
 0x386   : > { %4043 = vpow2.f32 %v3277_v31  ;;  %v5098_v50 = vadd.f32 %v5072_v5, %v1569_v42 }
 0x387   : > { %v1527_v51 = vpop.f32.mrf.mxu1 }
 0x388   : > { %v3278_v19 = vmul.f32 -1.442695, %v5098_v50  ;;  %v1570_v35 = vadd.f32 %v1527_v51, %v1360_v47  ;;  %v1384_v51 = vadd.f32 %v5074_v6, %v5049_v48  ;;  %v1387_v48 = vadd.f32 %v5079_v13, %v5053_v53 }
 0x389   : > { %v3625_v52 = vpop.f32.mrf.mxu1  ;;  %v1392_v53 = vadd.f32 %v5086_v25, %v5059_v58  ;;  %v1395_v58 = vadd.f32 %v5093_v39, %v5064_v63 }
 0x38a   : > { %4045 = vpow2.f32 %v3278_v19  ;;  %v5104_v56 = vadd.f32 %v5072_v5, %v1570_v35 }
 0x38b   : > { %v4040_v60 = vpop.eup %4039  ;;  %v1530_v61 = vpop.f32.mrf.mxu1 }
 0x38c   : > { %v1640_v62 = vadd.f32 1.0, %v4040_v60  ;;  %v3279_v22 = vmul.f32 -1.442695, %v5104_v56  ;;  %v1571_v41 = vadd.f32 %v1530_v61, %v1363_v55 }
 0x38d   : > { %v3626_v2 = vpop.f32.mrf.mxu1 }
 0x38e   : > { %v5110_v4 = vadd.f32 %v5072_v5, %v1571_v41  ;;  %4047 = vpow2.f32 %v3279_v22 }
 0x38f   : > { %v4042_v7 = vpop.eup %4041  ;;  %v1535_v26 = vpop.f32.mrf.mxu1  ;;  %4049 = vrcp.f32 %v1640_v62 }
 0x390   : > { %v1641_v45 = vadd.f32 1.0, %v4042_v7  ;;  %v3280_v8 = vmul.f32 -1.442695, %v5110_v4  ;;  %v1572_v9 = vadd.f32 %v1535_v26, %v1368_v3 }
 0x391   : > { %v3629_v10 = vpop.f32.mrf.mxu1 }
 0x392   : > { %4051 = vrcp.f32 %v1641_v45  ;;  %v5116_v16 = vadd.f32 %v5072_v5, %v1572_v9 }
 0x393   : > { %v4044_v30 = vpop.eup %4043  ;;  %4053 = vpow2.f32 %v3280_v8  ;;  %v1538_v49 = vpop.f32.mrf.mxu1 }
 0x394   : > { %v1642_v17 = vadd.f32 1.0, %v4044_v30  ;;  %v3281_v20 = vmul.f32 -1.442695, %v5116_v16  ;;  %v1573_v14 = vadd.f32 %v1538_v49, %v1371_v11 }
 0x395   : > { %v3630_v21 = vpop.f32.mrf.mxu1 }
 0x396   : > { %v5122_v18 = vadd.f32 %v5072_v5, %v1573_v14  ;;  %4055 = vpow2.f32 %v3281_v20 }
 0x397   : > { %v4046_v27 = vpop.eup %4045  ;;  %v1543_v34 = vpop.f32.mrf.mxu1  ;;  %4057 = vrcp.f32 %v1642_v17 }
 0x398   : > { %v1643_v54 = vadd.f32 1.0, %v4046_v27  ;;  %v3282_v28 = vmul.f32 -1.442695, %v5122_v18  ;;  %v1574_v29 = vadd.f32 %v1543_v34, %v1376_v23 }
 0x399   : > { %v3633_v32 = vpop.f32.mrf.mxu1 }
 0x39a   : > { %4059 = vrcp.f32 %v1643_v54  ;;  %v5128_v15 = vadd.f32 %v5072_v5, %v1574_v29 }
 0x39b   : > { %4061 = vpow2.f32 %v3282_v28  ;;  %v1546_v40 = vpop.f32.mrf.mxu1  ;;  %v4048_v59 = vpop.eup %4047 }
 0x39c   : > { %v3283_v31 = vmul.f32 -1.442695, %v5128_v15  ;;  %v1575_v42 = vadd.f32 %v1546_v40, %v1379_v33  ;;  %v4050_v43 = vpop.eup %4049  ;;  %v1644_v46 = vadd.f32 1.0, %v4048_v59 }
 0x39d   : > { %v3634_v47 = vpop.f32.mrf.mxu1  ;;  %v1682_v52 = vmul.f32 %v4050_v43, %v5077_v12 }
 0x39e   : > { %4063 = vpow2.f32 %v3283_v31  ;;  %v5134_v19 = vadd.f32 %v5072_v5, %v1575_v42 }
 0x39f   : > { %v4052_v44 = vpop.eup %4051  ;;  %v1551_v0 = vpop.f32.mrf.mxu1  ;;  %4065 = vrcp.f32 %v1644_v46 }
 0x3a0   : > { %v4054_v35 = vpop.eup %4053  ;;  %v1683_v55 = vmul.f32 %v4052_v44, %v5084_v24  ;;  %v3284_v60 = vmul.f32 -1.442695, %v5134_v19  ;;  %v1576_v61 = vadd.f32 %v1551_v0, %v1384_v51 }
 0x3a1   : > { %v1645_v62 = vadd.f32 1.0, %v4054_v35  ;;  %v3637_v22 = vpop.f32.mrf.mxu1 }
 0x3a2   : > { %v1696_v6 = vpack.c.bf16 %v1683_v55, %v1682_v52  ;;  %4067 = vpow2.f32 %v3284_v60  ;;  %v5142_v41 = vadd.f32 %v5072_v5, %v1576_v61 }
 0x3a3   : > { %4069 = vrcp.f32 %v1645_v62  ;;  %v1554_v2 = vpop.f32.mrf.mxu1  ;;  %v4056_v3 = vpop.eup %4055 }
 0x3a4   : > { %v3285_v12 = vmul.f32 -1.442695, %v5142_v41  ;;  %v1577_v24 = vadd.f32 %v1554_v2, %v1387_v48  ;;  %3660 = vmatmul.mubr.bf16.vlgmr.msra.gmra.mxu0 %v1696_v6  ;;  %v4058_v7 = vpop.eup %4057  ;;  %v1646_v26 = vadd.f32 1.0, %v4056_v3 }
 0x3a5   : > { %v3638_v45 = vpop.f32.mrf.mxu1  ;;  %3663 = vmatprep.mubr.msk.bf16.mxu0 %vm4457_vm1, %v4456_v37  ;;  %v1684_v11 = vmul.f32 %v4058_v7, %v5091_v38 }
 0x3a6   : > { %4071 = vpow2.f32 %v3285_v12  ;;  %v5150_v13 = vadd.f32 %v5072_v5, %v1577_v24  ;;  %v4001_v45 = vld [vmem:[%s5543_s18 + $0x10] sm:$0xff]  }
 0x3a7   : > { %v4060_v8 = vpop.eup %4059  ;;  %v1559_v9 = vpop.f32.mrf.mxu1  ;;  %4073 = vrcp.f32 %v1646_v26  ;;  %v4000_v26 = vld [vmem:[%s5543_s18 + $0x8] sm:$0xff]  }
 0x3a8   : > { %v4062_v10 = vpop.eup %4061  ;;  %v1685_v30 = vmul.f32 %v4060_v8, %v5098_v50  ;;  %v3286_v49 = vmul.f32 -1.442695, %v5150_v13  ;;  %v1578_v17 = vadd.f32 %v1559_v9, %v1392_v53  ;;  %v4002_v53 = vld [vmem:[%s5543_s18 + $0x18] sm:$0xff]   ;;  %v4004_v8 = vld [vmem:[%s5543_s18 + $0x28] sm:$0xff]   ;;  %v4005_v9 = vld [vmem:[%s5543_s18 + $0x30] sm:$0xff]  }
 0x3a9   : > { %v1647_v20 = vadd.f32 1.0, %v4062_v10  ;;  %v3641_v14 = vpop.f32.mrf.mxu1  ;;  %v1721_v10 = vsub.s32 1, %v5057_v57 }
 0x3aa   : > { %4075 = vpow2.f32 %v3286_v49  ;;  %v1596_v25 = vadd.f32 %v5072_v5, %v1578_v17  ;;  %v1697_v21 = vpack.c.bf16 %v1685_v30, %v1684_v11  ;;  %v4010_v11 = vld [vmem:[%s4794_s20 + $0xb8] sm:$0xff]   ;;  %v4013_v17 = vld [vmem:[%s4794_s20 + $0xb0] sm:$0xff]  }
 0x3ab   : > { %v4064_v23 = vpop.eup %4063  ;;  %4077 = vrcp.f32 %v1647_v20  ;;  %v1562_v27 = vpop.f32.mrf.mxu1  ;;  %v5205_v30 = vrot.slane %v5069_v1, %v1721_v10  ;;  %3706 = vmatpush3.bf16.msra.mxu0 %v4010_v11 }
 0x3ac   : > { %v1648_v34 = vadd.f32 1.0, %v4064_v23  ;;  %v3287_v38 = vmul.f32 -1.442695, %v1596_v25  ;;  %v1579_v54 = vadd.f32 %v1562_v27, %v1395_v58  ;;  %3664 = vmatmul.mubr.bf16.gmra.mxu0 %v1697_v21  ;;  %v4066_v28 = vpop.eup %4065  ;;  %3707 = vmatprep.subr.bf16.mxu0 %v4456_v37  ;;  %v4016_v21 = vld [vmem:[%s4794_s20 + $0xa8] sm:$0xff]  }
 0x3ad   : > { %v3642_v50 = vpop.f32.mrf.mxu1  ;;  %3667 = vmatprep.mubr.msk.bf16.mxu0 %vm4457_vm1, %v4456_v37  ;;  %v1686_v40 = vmul.f32 %v4066_v28, %v5104_v56 }
 0x3ae   : > { %v1597_v29 = vadd.f32 %v5072_v5, %v1579_v54  ;;  %4079 = vpow2.f32 %v3287_v38  ;;  %v4019_v54 = vld [vmem:[%s4794_s20 + $0xa0] sm:$0xff]  }
 0x3af   : > { %v4068_v32 = vpop.eup %4067  ;;  %4081 = vrcp.f32 %v1648_v34  ;;  %3708 = vmatpush3.bf16.msra.mxu0 %v4013_v17 }
 0x3b0   : > { %v4070_v63 = vpop.eup %4069  ;;  %v1649_v39 = vadd.f32 1.0, %v4068_v32  ;;  %v3288_v33 = vmul.f32 -1.442695, %v1597_v29  ;;  %3709 = vmatprep.subr.bf16.mxu0 %v4456_v37 }
 0x3b1   : > { %v1687_v59 = vmul.f32 %v4070_v63, %v5110_v4 }
 0x3b2   : > { %4083 = vrcp.f32 %v1649_v39 }
 0x3b3   : > { %v4072_v31 = vpop.eup %4071  ;;  %4085 = vpow2.f32 %v3288_v33  ;;  %v1698_v42 = vpack.c.bf16 %v1687_v59, %v1686_v40  ;;  %3710 = vmatpush3.bf16.msra.mxu0 %v4016_v21 }
 0x3b4   : > { %v1650_v43 = vadd.f32 1.0, %v4072_v31  ;;  %v4074_v46 = vpop.eup %4073  ;;  %3711 = vmatprep.subr.bf16.mxu0 %v4456_v37 }
 0x3b5   : > { %3668 = vmatmul.mubr.bf16.gmra.mxu0 %v1698_v42  ;;  %v1688_v44 = vmul.f32 %v4074_v46, %v5116_v16 }
 0x3b6   : > { %3671 = vmatprep.mubr.msk.bf16.mxu0 %vm4457_vm1, %v4456_v37  ;;  %4087 = vrcp.f32 %v1650_v43 }
 0x3b7   : > { %v4076_v5 = vpop.eup %4075  ;;  %3712 = vmatpush3.bf16.msra.mxu0 %v4019_v54 }
 0x3b8   : > { %v4078_v47 = vpop.eup %4077  ;;  %v1651_v51 = vadd.f32 1.0, %v4076_v5  ;;  %3713 = vmatprep.subr.bf16.mxu0 %v4456_v37 }
 0x3b9   : > { %v1689_v56 = vmul.f32 %v4078_v47, %v5122_v18 }
 0x3ba   : > { %4089 = vrcp.f32 %v1651_v51 }
 0x3bb   : > { %v1699_v4 = vpack.c.bf16 %v1689_v56, %v1688_v44  ;;  %v4080_v0 = vpop.eup %4079 }
 0x3bc   : > { %v4082_v35 = vpop.eup %4081  ;;  %v1652_v52 = vadd.f32 1.0, %v4080_v0 }
 0x3bd   : > { %3672 = vmatmul.mubr.bf16.gmra.mxu0 %v1699_v4  ;;  %v1690_v61 = vmul.f32 %v4082_v35, %v5128_v15 }
 0x3be   : > { %3675 = vmatprep.mubr.msk.bf16.mxu0 %vm4457_vm1, %v4456_v37  ;;  %4091 = vrcp.f32 %v1652_v52 }
 0x3bf   : > { %v4084_v55 = vpop.eup %4083 }
 0x3c0   : > { %v4086_v60 = vpop.eup %4085  ;;  %v1691_v62 = vmul.f32 %v4084_v55, %v5134_v19 }
 0x3c1   : > { %v1653_v22 = vadd.f32 1.0, %v4086_v60 }
 0x3c2   : > { %v1700_v16 = vpack.c.bf16 %v1691_v62, %v1690_v61 }
 0x3c3   : > { %4093 = vrcp.f32 %v1653_v22  ;;  %v4088_v18 = vpop.eup %4087 }
 0x3c4   : > { %v1692_v6 = vmul.f32 %v4088_v18, %v5142_v41  ;;  %v3999_v41 = vld [vmem:[%s5543_s18] sm:$0xff]  }
 0x3c5   : > { %3676 = vmatmul.mubr.bf16.gmra.mxu0 %v1700_v16  ;;  %2021 = vxpose.xlu0.c.b16.start [1/7] (short) (narrow) %v3999_v41, 16 }
 0x3c6   : > { %3679 = vmatprep.mubr.msk.bf16.mxu0 %vm4457_vm1, %v4456_v37 }
 0x3c7   : > { %v4090_v48 = vpop.eup %4089 }
 0x3c8   : > { %v1693_v2 = vmul.f32 %v4090_v48, %v5150_v13  ;;  %v4003_v13 = vld [vmem:[%s5543_s18 + $0x20] sm:$0xff]  }
 0x3c9   : > { %2022 = vxpose.xlu0.c.b16.cont [2/7] (short) (narrow) %v4000_v26, 16 }
 0x3ca   : > { %v1701_v3 = vpack.c.bf16 %v1693_v2, %v1692_v6 }
 0x3cb   : > { %v4092_v12 = vpop.eup %4091 }
 0x3cc   : > { %v1694_v19 = vmul.f32 %v4092_v12, %v1596_v25 }
 0x3cd   : > { %3680 = vmatmul.mubr.bf16.gmra.mxu0 %v1701_v3  ;;  %2023 = vxpose.xlu0.c.b16.cont [3/7] (short) (narrow) %v4001_v45, 16 }
 0x3ce   : > { %3683 = vmatprep.mubr.msk.bf16.mxu0 %vm4457_vm1, %v4456_v37 }
 0x3d0   : > { %v4094_v15 = vpop.eup %4093 }
 0x3d1   : > { %v1695_v24 = vmul.f32 %v4094_v15, %v1597_v29  ;;  %2024 = vxpose.xlu0.c.b16.cont [4/7] (short) (narrow) %v4002_v53, 16  ;;  %v4022_v29 = vld [vmem:[%s4794_s20 + $0x98] sm:$0xff]  }
 0x3d2   : > { %3714 = vmatpush3.bf16.msra.mxu0 %v4022_v29 }
 0x3d3   : > { %v1702_v7 = vpack.c.bf16 %v1695_v24, %v1694_v19  ;;  %3715 = vmatprep.subr.bf16.mxu0 %v4456_v37 }
 0x3d5   : > { %3684 = vmatmul.mubr.bf16.gmra.mxu0 %v1702_v7  ;;  %2025 = vxpose.xlu0.c.b16.cont [5/7] (short) (narrow) %v4003_v13, 16 }
 0x3d6   : > { %3721 = vmatprep.mubr.msk.bf16.mxu0 %vm4457_vm1, %v4456_v37 }
 0x3d9   : > { %2026 = vxpose.xlu0.c.b16.cont [6/7] (short) (narrow) %v4004_v8, 16 }
 0x3dd   : > { %2027 = vxpose.xlu0.c.b16.end [7/7] (short) (narrow) %v4005_v9, 16 }
 0x464   : > { %v1805_v49 = vpop.f32.mrf.mxu0 }
 0x465   : > { %v1806_v20 = vadd.f32 %v1805_v49, %v5205_v30 }
 0x466   : > { %v3661_v14 = vpop.f32.mrf.mxu0 }
 0x467   : > { %v3297_v58 = vmul.f32 -1.442695, %v1806_v20 }
 0x468   : > { %v1808_v25 = vpop.f32.mrf.mxu0 }
 0x469   : > { %4095 = vpow2.f32 %v3297_v58  ;;  %v1809_v23 = vadd.f32 %v1808_v25, %v5205_v30 }
 0x46a   : > { %v3662_v27 = vpop.f32.mrf.mxu0 }
 0x46b   : > { %v3298_v34 = vmul.f32 -1.442695, %v1809_v23 }
 0x46c   : > { %v5214_v38 = vpop.f32.mrf.mxu0 }
 0x46d   : > { %4097 = vpow2.f32 %v3298_v34 }
 0x46e   : > { %v3665_v50 = vpop.f32.mrf.mxu0 }
 0x470   : > { %v1816_v28 = vpop.f32.mrf.mxu0 }
 0x471   : > { %v5265_v25 = vadd.f32 %v1816_v28, %v5205_v30 }
 0x472   : > { %v3666_v32 = vpop.f32.mrf.mxu0 }
 0x473   : > { %v3300_v54 = vmul.f32 -1.442695, %v5265_v25 }
 0x475   : > { %v1821_v63 = vpop.f32.mrf.mxu0 }
 0x476   : > { %v4096_v39 = vpop.eup %4095  ;;  %v5261_v14 = vadd.f32 %v1821_v63, %v5205_v30 }
 0x477   : > { %v1902_v33 = vadd.f32 1.0, %v4096_v39  ;;  %v3669_v40 = vpop.f32.mrf.mxu0 }
 0x478   : > { %v3301_v27 = vmul.f32 -1.442695, %v5261_v14 }
 0x479   : > { %v1824_v59 = vpop.f32.mrf.mxu0  ;;  %4099 = vrcp.f32 %v1902_v33 }
 0x47a   : > { %v4098_v31 = vpop.eup %4097  ;;  %v5257_v17 = vadd.f32 %v1824_v59, %v5205_v30 }
 0x47b   : > { %v1903_v42 = vadd.f32 1.0, %v4098_v31  ;;  %v3670_v43 = vpop.f32.mrf.mxu0 }
 0x47c   : > { %v3302_v21 = vmul.f32 -1.442695, %v5257_v17 }
 0x47d   : > { %4101 = vrcp.f32 %v1903_v42  ;;  %v1829_v46 = vpop.f32.mrf.mxu0 }
 0x47e   : > { %v5252_v9 = vadd.f32 %v1829_v46, %v5205_v30 }
 0x47f   : > { %v3673_v5 = vpop.f32.mrf.mxu0 }
 0x480   : > { %v3303_v58 = vmul.f32 -1.442695, %v5252_v9 }
 0x481   : > { %v1832_v47 = vpop.f32.mrf.mxu0 }
 0x482   : > { %v5246_v53 = vadd.f32 %v1832_v47, %v5205_v30 }
 0x483   : > { %v3674_v51 = vpop.f32.mrf.mxu0 }
 0x485   : > { %v1837_v44 = vpop.f32.mrf.mxu0 }
 0x486   : > { %v4100_v4 = vpop.eup %4099  ;;  %v5240_v24 = vadd.f32 %v1837_v44, %v5205_v30 }
 0x487   : > { %v3677_v56 = vpop.f32.mrf.mxu0  ;;  %v5220_v52 = vmul.f32 %v4100_v4, %v1806_v20  ;;  %v3304_v20 = vmul.f32 -1.442695, %v5246_v53 }
 0x488   : > { %v3305_v11 = vmul.f32 -1.442695, %v5240_v24 }
 0x489   : > { %v1840_v0 = vpop.f32.mrf.mxu0 }
 0x48a   : > { %v4102_v35 = vpop.eup %4101  ;;  %v5233_v2 = vadd.f32 %v1840_v0, %v5205_v30 }
 0x48b   : > { %v5222_v55 = vmul.f32 %v4102_v35, %v1809_v23  ;;  %v3678_v60 = vpop.f32.mrf.mxu0  ;;  %v5270_v23 = vadd.f32 %v5214_v38, %v5205_v30 }
 0x48c   : > { %v3306_v26 = vmul.f32 -1.442695, %v5233_v2 }
 0x48d   : > { %v1972_v61 = vpack.c.bf16 %v5222_v55, %v5220_v52  ;;  %v1845_v62 = vpop.f32.mrf.mxu0  ;;  %v3299_v29 = vmul.f32 -1.442695, %v5270_v23  ;;  %v4014_v52 = vld [vmem:[%s4794_s20 + $0x60] sm:$0xff]  }
 0x48e   : > { %v5230_v6 = vadd.f32 %v1845_v62, %v5205_v30  ;;  %v4015_v55 = vld [vmem:[%s4794_s20 + $0x20] sm:$0xff]  }
 0x48f   : > { %v3681_v22 = vpop.f32.mrf.mxu0 }
 0x490   : > { %v3307_v7 = vmul.f32 -1.442695, %v5230_v6 }
 0x491   : > { %v1848_v16 = vpop.f32.mrf.mxu0 }
 0x492   : > { %v5227_v18 = vadd.f32 %v1848_v16, %v5205_v30 }
 0x493   : > { %v3682_v48 = vpop.f32.mrf.mxu0 }
 0x494   : > { %v3308_v3 = vmul.f32 -1.442695, %v5227_v18 }
 0x495   : > { %v1853_v12 = vpop.f32.mrf.mxu0 }
 0x496   : > { %v5237_v15 = vadd.f32 %v1853_v12, %v5205_v30  ;;  %4103 = vpow2.f32 %v3308_v3 }
 0x497   : > { %v3685_v19 = vpop.f32.mrf.mxu0 }
 0x498   : > { %v3309_v41 = vmul.f32 -1.442695, %v5237_v15 }
 0x499   : > { %v1856_v45 = vpop.f32.mrf.mxu0 }
 0x49a   : > { %4105 = vpow2.f32 %v3309_v41  ;;  %v5249_v13 = vadd.f32 %v1856_v45, %v5205_v30 }
 0x49b   : > { %v3686_v8 = vpop.f32.mrf.mxu0  ;;  %4107 = vpow2.f32 %v3307_v7 }
 0x49c   : > { %v3310_v49 = vmul.f32 -1.442695, %v5249_v13  ;;  %4109 = vpow2.f32 %v3306_v26 }
 0x49e   : > { %4111 = vpow2.f32 %v3310_v49 }
 0x49f   : > { %4113 = vpow2.f32 %v3305_v11 }
 0x4a0   : > { %4115 = vpow2.f32 %v3304_v20 }
 0x4a1   : > { %4117 = vpow2.f32 %v3303_v58 }
 0x4a2   : > { %4119 = vpow2.f32 %v3302_v21 }
 0x4a3   : > { %v4104_v34 = vpop.eup %4103  ;;  %4121 = vpow2.f32 %v3301_v27 }
 0x4a4   : > { %v1913_v63 = vadd.f32 1.0, %v4104_v34  ;;  %4123 = vpow2.f32 %v3300_v54 }
 0x4a5   : > { %4125 = vpow2.f32 %v3299_v29  ;;  %v4008_v29 = vld [vmem:[%s4794_s20 + $0x70] sm:$0xff]  }
 0x4a7   : > { %v4106_v50 = vpop.eup %4105 }
 0x4a8   : > { %v1914_v28 = vadd.f32 1.0, %v4106_v50  ;;  %v4108_v32 = vpop.eup %4107 }
 0x4a9   : > { %v4110_v39 = vpop.eup %4109  ;;  %v1912_v30 = vadd.f32 1.0, %v4108_v32  ;;  %v4011_v32 = vld [vmem:[%s4794_s20 + $0x68] sm:$0xff]  }
 0x4aa   : > { %4127 = vrcp.f32 %v1914_v28  ;;  %v1911_v59 = vadd.f32 1.0, %v4110_v39  ;;  %v4009_v28 = vld [vmem:[%s4794_s20 + $0x30] sm:$0xff]   ;;  %v4018_v39 = vld [vmem:[%s4794_s20 + $0x18] sm:$0xff]  }
 0x4ab   : > { %v4112_v33 = vpop.eup %4111  ;;  %4129 = vrcp.f32 %v1913_v63  ;;  %v4012_v63 = vld [vmem:[%s4794_s20 + $0x28] sm:$0xff]  }
 0x4ac   : > { %v1915_v38 = vadd.f32 1.0, %v4112_v33  ;;  %v4114_v40 = vpop.eup %4113  ;;  %v4020_v33 = vld [vmem:[%s4794_s20 + $0x50] sm:$0xff]  }
 0x4ad   : > { %v4116_v31 = vpop.eup %4115  ;;  %v1910_v42 = vadd.f32 1.0, %v4114_v40  ;;  %v4023_v40 = vld [vmem:[%s4794_s20 + $0x48] sm:$0xff]  }
 0x4ae   : > { %4131 = vrcp.f32 %v1915_v38  ;;  %v4118_v43 = vpop.eup %4117  ;;  %v1909_v46 = vadd.f32 1.0, %v4116_v31  ;;  %v4025_v38 = vld [vmem:[%s4794_s20 + $0x90] sm:$0xff]   ;;  %v4028_v31 = vld [vmem:[%s4794_s20 + $0x88] sm:$0xff]  }
 0x4af   : > { %4133 = vrcp.f32 %v1912_v30  ;;  %v4120_v5 = vpop.eup %4119  ;;  %v1908_v47 = vadd.f32 1.0, %v4118_v43  ;;  %v4021_v30 = vld [vmem:[%s4794_s20 + $0x10] sm:$0xff]   ;;  %3716 = vmatpush3.bf16.msra.mxu0 %v4025_v38  ;;  %v4027_v43 = vld [vmem:[%s4794_s20] sm:$0xff]  }
 0x4b0   : > { %4135 = vrcp.f32 %v1911_v59  ;;  %v4122_v51 = vpop.eup %4121  ;;  %v1907_v44 = vadd.f32 1.0, %v4120_v5  ;;  %3717 = vmatprep.subr.bf16.mxu0 %v4456_v37  ;;  %v4024_v59 = vld [vmem:[%s4794_s20 + $0x8] sm:$0xff]   ;;  %v4030_v5 = vld [vmem:[%s5544_s27] sm:$0xff]  }
 0x4b1   : > { %4137 = vrcp.f32 %v1910_v42  ;;  %v4124_v56 = vpop.eup %4123  ;;  %v1906_v0 = vadd.f32 1.0, %v4122_v51  ;;  %v4026_v42 = vld [vmem:[%s4794_s20 + $0x40] sm:$0xff]  }
 0x4b2   : > { %4139 = vrcp.f32 %v1909_v46  ;;  %v4126_v4 = vpop.eup %4125  ;;  %v1905_v62 = vadd.f32 1.0, %v4124_v56  ;;  %v4029_v46 = vld [vmem:[%s4794_s20 + $0x80] sm:$0xff]  }
 0x4b3   : > { %4141 = vrcp.f32 %v1908_v47  ;;  %v1904_v16 = vadd.f32 1.0, %v4126_v4  ;;  %3718 = vmatpush3.bf16.msra.mxu0 %v4028_v31 }
 0x4b4   : > { %4143 = vrcp.f32 %v1907_v44  ;;  %3719 = vmatprep.subr.bf16.mxu0 %v4456_v37 }
 0x4b5   : > { %4145 = vrcp.f32 %v1906_v0 }
 0x4b6   : > { %4147 = vrcp.f32 %v1905_v62 }
 0x4b7   : > { %v4128_v35 = vpop.eup %4127  ;;  %4149 = vrcp.f32 %v1904_v16  ;;  %3720 = vmatpush3.bf16.msra.mxu0 %v4029_v46  ;;  %v4032_v16 = vld [vmem:[%s4800_s30 + $0x30] sm:$0xff]  }
 0x4b8   : > { %v4130_v60 = vpop.eup %4129  ;;  %v1956_v48 = vmul.f32 %v4128_v35, %v5237_v15 }
 0x4b9   : > { %v1955_v19 = vmul.f32 %v4130_v60, %v5227_v18 }
 0x4ba   : > { %3722 = vmatmul.mubr.bf16.vlgmr.msra.gmra.mxu0 %v4030_v5 }
 0x4bb   : > { %v4132_v22 = vpop.eup %4131 }
 0x4bc   : > { %v1957_v3 = vmul.f32 %v4132_v22, %v5249_v13  ;;  %v4134_v12 = vpop.eup %4133  ;;  %v4031_v22 = vld [vmem:[%s4800_s30 + $0x38] sm:$0xff]  }
 0x4bd   : > { %v4136_v41 = vpop.eup %4135  ;;  %v1954_v26 = vmul.f32 %v4134_v12, %v5230_v6  ;;  %v4036_v12 = vld [vmem:[%s4800_s30 + $0x10] sm:$0xff]  }
 0x4be   : > { %v1978_v7 = vpack.c.bf16 %v1957_v3, %v1956_v48  ;;  %v4138_v45 = vpop.eup %4137  ;;  %v1953_v8 = vmul.f32 %v4136_v41, %v5233_v2  ;;  %v4034_v48 = vld [vmem:[%s4800_s30 + $0x20] sm:$0xff]   ;;  %v4035_v3 = vld [vmem:[%s4800_s30 + $0x18] sm:$0xff]   ;;  %v2141_v41 = vsub.s32 2, %v5057_v57 }
 0x4bf   : > { %v1977_v11 = vpack.c.bf16 %v1955_v19, %v1954_v26  ;;  %v4140_v49 = vpop.eup %4139  ;;  %v1952_v15 = vmul.f32 %v4138_v45, %v5240_v24  ;;  %v4037_v19 = vld [vmem:[%s4800_s30 + $0x8] sm:$0xff]  }
 0x4c0   : > { %3688 = vmatpush3.bf16.msra.mxu1 %v1978_v7  ;;  %v4142_v13 = vpop.eup %4141  ;;  %v1951_v18 = vmul.f32 %v4140_v49, %v5246_v53  ;;  %v4038_v7 = vld [vmem:[%s4800_s30] sm:$0xff]   ;;  %v2142_v45 = vrot.slane %v5069_v1, %v2141_v41 }
 0x4c1   : > { %3689 = vmatprep.subr.bf16.mxu1 %v4456_v37  ;;  %v1976_v20 = vpack.c.bf16 %v1953_v8, %v1952_v15  ;;  %v4144_v58 = vpop.eup %4143  ;;  %v1950_v6 = vmul.f32 %v4142_v13, %v5252_v9 }
 0x4c2   : > { %v4146_v21 = vpop.eup %4145  ;;  %v1949_v2 = vmul.f32 %v4144_v58, %v5257_v17 }
 0x4c3   : > { %v1975_v27 = vpack.c.bf16 %v1951_v18, %v1950_v6  ;;  %v4148_v34 = vpop.eup %4147  ;;  %v1948_v24 = vmul.f32 %v4146_v21, %v5261_v14  ;;  %v4006_v14 = vld [vmem:[%s4794_s20 + $0x78] sm:$0xff]  }
 0x4c4   : > { %3690 = vmatpush3.bf16.msra.mxu1 %v1977_v11  ;;  %v4150_v54 = vpop.eup %4149  ;;  %v1947_v53 = vmul.f32 %v4148_v34, %v5265_v25  ;;  %v2029_v25 = vpop.trf.xlu0 }
 0x4c5   : > { %3691 = vmatprep.subr.bf16.mxu1 %v4456_v37  ;;  %v1974_v9 = vpack.c.bf16 %v1949_v2, %v1948_v24  ;;  %v1946_v50 = vmul.f32 %v4150_v54, %v5270_v23  ;;  %v4007_v23 = vld [vmem:[%s4794_s20 + $0x38] sm:$0xff]  }
 0x4c7   : > { %v1973_v17 = vpack.c.bf16 %v1947_v53, %v1946_v50 }
 0x4c8   : > { %3692 = vmatpush3.bf16.msra.mxu1 %v1976_v20 }
 0x4c9   : > { %3693 = vmatprep.subr.bf16.mxu1 %v4456_v37 }
 0x4cc   : > { %3694 = vmatpush3.bf16.msra.mxu1 %v1975_v27 }
 0x4cd   : > { %3695 = vmatprep.subr.bf16.mxu1 %v4456_v37 }
 0x4d0   : > { %3696 = vmatpush3.bf16.msra.mxu1 %v1974_v9 }
 0x4d1   : > { %3697 = vmatprep.subr.bf16.mxu1 %v4456_v37 }
 0x4d4   : > { %3698 = vmatpush3.bf16.msra.mxu1 %v1973_v17 }
 0x4d5   : > { %3699 = vmatprep.subr.bf16.mxu1 %v4456_v37 }
 0x4d8   : > { %3700 = vmatpush3.bf16.msra.mxu1 %v1972_v61  ;;  %v4017_v61 = vld [vmem:[%s4794_s20 + $0x58] sm:$0xff]  }
 0x4d9   : > { %3455 = vmatprep.subr.bf16.mxu1 %v4006_v14  ;;  %v2402_v14 = vsub.s32 3, %v5057_v57 }
 0x4db   : > { %3702 = vmatmul.mubr.msk.bf16.vlgmr.msra.gmra.mxu1 %vm2037_vm6, %v2029_v25  ;;  %v2403_v25 = vrot.slane %v5069_v1, %v2402_v14 }
 0x4dc   : > { %3456 = vmatpush3.bf16.msra.mxu1 %v4007_v23 }
 0x4dd   : > { %3457 = vmatprep.subr.bf16.mxu1 %v4008_v29 }
 0x4e0   : > { %3458 = vmatpush3.bf16.msra.mxu1 %v4009_v28 }
 0x4e1   : > { %3459 = vmatprep.subr.bf16.mxu1 %v4011_v32  ;;  %v4159_v32 = vld [vmem:[#allocation13] sm:$0xff] }
 0x4e4   : > { %3460 = vmatpush3.bf16.msra.mxu1 %v4012_v63 }
 0x4e5   : > { %3461 = vmatprep.subr.bf16.mxu1 %v4014_v52 }
 0x4e8   : > { %3462 = vmatpush3.bf16.msra.mxu1 %v4015_v55 }
 0x4e9   : > { %3463 = vmatprep.subr.bf16.mxu1 %v4017_v61 }
 0x4ec   : > { %3464 = vmatpush3.bf16.msra.mxu1 %v4018_v39  ;;  %v4160_v39 = vld [vmem:[#allocation13 + $0x8] sm:$0xff] }
 0x4ed   : > { %3465 = vmatprep.subr.bf16.mxu1 %v4020_v33 }
 0x4f0   : > { %3466 = vmatpush3.bf16.msra.mxu1 %v4021_v30 }
 0x4f1   : > { %3467 = vmatprep.subr.bf16.mxu1 %v4023_v40 }
 0x4f4   : > { %3468 = vmatpush3.bf16.msra.mxu1 %v4024_v59 }
 0x4f5   : > { %3469 = vmatprep.subr.bf16.mxu1 %v4026_v42 }
 0x4f8   : > { %3470 = vmatpush3.bf16.msra.mxu1 %v4027_v43 }
 0x4f9   : > { %3725 = vmatprep.subr.bf16.mxu1 %v4456_v37 }
 0x57a   : > { %v2362_v0 = vpop.f32.mrf.mxu0 }
 0x57c   : > { %v3723_v35 = vpop.f32.mrf.mxu0 }
 0x57e   : > { %v2365_v60 = vpop.f32.mrf.mxu0 }
 0x580   : > { %v3724_v62 = vpop.f32.mrf.mxu0 }
 0x59b   : > { %v2075_v47 = vpop.f32.mrf.mxu1 }
 0x59d   : > { %v3703_v51 = vpop.f32.mrf.mxu1 }
 0x59f   : > { %v2078_v44 = vpop.f32.mrf.mxu1 }
 0x5a0   : > { %v2082_v56 = vpack.c.bf16 %v2078_v44, %v2075_v47 }
 0x5a1   : > { %v3704_v4 = vpop.f32.mrf.mxu1 }
 0x5a2   : > { %2319 = vmatprep.mubr.bf16.mxu1 %v2082_v56 }
 0x5a3   : > { %2320 = vmatmul.mubr.bf16.vlgmr.msra.gmra.mxu1 %v4875_v36  ;;  %v4033_v36 = vld [vmem:[%s4800_s30 + $0x28] sm:$0xff]  }
 0x5a4   : > { %3741 = vmatprep.mubr.msk.bf16.mxu1 %vm4457_vm1, %v4456_v37  ;;  %3726 = vmatpush3.bf16.msra.mxu1 %v4031_v22 }
 0x5a5   : > { %3727 = vmatprep.subr.bf16.mxu1 %v4456_v37 }
 0x5a8   : > { %3728 = vmatpush3.bf16.msra.mxu1 %v4032_v16 }
 0x5a9   : > { %3729 = vmatprep.subr.bf16.mxu1 %v4456_v37 }
 0x5ac   : > { %3730 = vmatpush3.bf16.msra.mxu1 %v4033_v36 }
 0x5ad   : > { %3731 = vmatprep.subr.bf16.mxu1 %v4456_v37 }
 0x5b0   : > { %3732 = vmatpush3.bf16.msra.mxu1 %v4034_v48 }
 0x5b1   : > { %3733 = vmatprep.subr.bf16.mxu1 %v4456_v37 }
 0x5b4   : > { %3734 = vmatpush3.bf16.msra.mxu1 %v4035_v3 }
 0x5b5   : > { %3735 = vmatprep.subr.bf16.mxu1 %v4456_v37 }
 0x5b8   : > { %3736 = vmatpush3.bf16.msra.mxu1 %v4036_v12 }
 0x5b9   : > { %3737 = vmatprep.subr.bf16.mxu1 %v4456_v37 }
 0x5bc   : > { %3738 = vmatpush3.bf16.msra.mxu1 %v4037_v19 }
 0x5bd   : > { %3739 = vmatprep.subr.bf16.mxu1 %v4456_v37 }
 0x5c0   : > { %3740 = vmatpush3.bf16.msra.mxu1 %v4038_v7 }
 0x663   : > { %v3471_v26 = vpop.f32.mrf.mxu1 }
 0x665   : > { %v3472_v8 = vpop.f32.mrf.mxu1 }
 0x666   : > { %v3473_v11 = vadd.f32 %v3472_v8, %v3471_v26 }
 0x667   : > { %v3474_v49 = vpop.f32.mrf.mxu1 }
 0x668   : > { %v2322_v15 = vadd.f32 %v3473_v11, %v2142_v45 }
 0x669   : > { %v3475_v13 = vpop.f32.mrf.mxu1 }
 0x66a   : > { %v3476_v18 = vadd.f32 %v3475_v13, %v3474_v49  ;;  %v2363_v20 = vadd.f32 %v2362_v0, %v2322_v15 }
 0x66c   : > { %v3344_v58 = vmul.f32 -1.442695, %v2363_v20  ;;  %v2325_v6 = vadd.f32 %v3476_v18, %v2142_v45 }
 0x66e   : > { %4151 = vpow2.f32 %v3344_v58  ;;  %v2366_v37 = vadd.f32 %v2365_v60, %v2325_v6 }
 0x670   : > { %v3345_v21 = vmul.f32 -1.442695, %v2366_v37 }
 0x672   : > { %4153 = vpow2.f32 %v3345_v21 }
 0x67b   : > { %v4152_v2 = vpop.eup %4151 }
 0x67c   : > { %v2375_v27 = vadd.f32 1.0, %v4152_v2 }
 0x67e   : > { %4155 = vrcp.f32 %v2375_v27 }
 0x67f   : > { %v4154_v34 = vpop.eup %4153 }
 0x680   : > { %v2376_v24 = vadd.f32 1.0, %v4154_v34 }
 0x682   : > { %4157 = vrcp.f32 %v2376_v24 }
 0x68b   : > { %v4156_v54 = vpop.eup %4155 }
 0x68c   : > { %v2381_v9 = vmul.f32 %v4156_v54, %v2363_v20 }
 0x68f   : > { %v4158_v53 = vpop.eup %4157 }
 0x690   : > { %v2382_v50 = vmul.f32 %v4158_v53, %v2366_v37 }
 0x692   : > { %v2383_v17 = vpack.c.bf16 %v2382_v50, %v2381_v9 }
 0x694   : > { %3742 = vmatmul.mubr.bf16.vlgmr.msra.gmra.mxu1 %v2383_v17 }
 0x754   : > { %v2486_v23 = vpop.f32.mrf.mxu1 }
 0x755   : > { %v2487_v29 = vadd.f32 %v2486_v23, %v2403_v25 }
 0x756   : > { %v3743_v28 = vpop.f32.mrf.mxu1 }
 0x757   : > { %v2493_v63 = vadd.f32 %v4159_v32, %v2487_v29 }
 0x758   : > { %v2489_v52 = vpop.f32.mrf.mxu1 }
 0x759   : > { %2495 = vst [vmem:[#allocation13] sm:$0xff] %v2493_v63  ;;  %v2490_v55 = vadd.f32 %v2489_v52, %v2403_v25  ;;  %2500 = sbr.rel (%p3354_p10) target bundleno = 2983 (0xba7), region = 128 }
 0x75a   : > { %v3744_v61 = vpop.f32.mrf.mxu1 }
 0x75b   : > { %v2494_v33 = vadd.f32 %v4160_v39, %v2490_v55 }
 0x75d   : > { %2496 = vst [vmem:[#allocation13 + $0x8] sm:$0xff] %v2494_v33 }
 0x75e   : > { %v4161_v30 = vld [vmem:[%s5545_s1 + $0x38] sm:$0xff]   ;;  %v4459_v1 = vmov 0.0   ;;  %v4162_v38 = vld [vmem:[%s5546_s28 + $0x30] sm:$0xff]   ;;  %vm4460_vm7 = vmmov 0   ;;  %v4163_v40 = vld [vmem:[%s5546_s28 + $0x28] sm:$0xff]   ;;  %v2502_v5 = vpack.c.bf16 %v2494_v33, %v2493_v63 }
 0x75f   : > { %3745 = vmatprep.subr.bf16.mxu0 %v4459_v1  ;;  %3765 = vmatprep.subr.bf16.mxu1 %v4459_v1  ;;  %v4164_v59 = vld [vmem:[%s5546_s28 + $0x20] sm:$0xff]   ;;  %v4165_v31 = vld [vmem:[%s5546_s28 + $0x18] sm:$0xff]   ;;  %v4166_v42 = vld [vmem:[%s5546_s28 + $0x10] sm:$0xff]  }
 0x760   : > { %3746 = vmatpush3.bf16.msra.mxu0 %v4161_v30  ;;  %3761 = vmatprep.mubr.msk.bf16.mxu0 %vm4460_vm7, %v4459_v1  ;;  %v4167_v43 = vld [vmem:[%s5546_s28 + $0x8] sm:$0xff]   ;;  %v4168_v46 = vld [vmem:[%s5546_s28] sm:$0xff]   ;;  %v4169_v47 = vld [vmem:[#allocation8 + $0x38] sm:$0xff]  }
 0x761   : > { %3747 = vmatprep.subr.bf16.mxu0 %v4459_v1  ;;  %3781 = vmatprep.mubr.msk.bf16.mxu1 %vm4460_vm7, %v4459_v1  ;;  %v4170_v51 = vld [vmem:[#allocation8 + $0x30] sm:$0xff]   ;;  %v4171_v44 = vld [vmem:[#allocation8 + $0x28] sm:$0xff]   ;;  %v4172_v56 = vld [vmem:[#allocation8 + $0x20] sm:$0xff]  }
 0x762   : > { %3766 = vmatpush3.bf16.msra.mxu1 %v4169_v47  ;;  %v4173_v4 = vld [vmem:[#allocation8 + $0x18] sm:$0xff]   ;;  %v4174_v0 = vld [vmem:[#allocation8 + $0x10] sm:$0xff]   ;;  %v4175_v35 = vld [vmem:[#allocation8 + $0x8] sm:$0xff]  }
 0x763   : > { %3767 = vmatprep.subr.bf16.mxu1 %v4459_v1  ;;  %v4176_v60 = vld [vmem:[#allocation8] sm:$0xff]   ;;  %v4177_v58 = vld [vmem:[#allocation10 + $0x38] sm:$0xff]   ;;  %v4178_v6 = vld [vmem:[#allocation10 + $0x30] sm:$0xff]  }
 0x764   : > { %3748 = vmatpush3.bf16.msra.mxu0 %v4162_v38  ;;  %v5399_v62 = vld [vmem:[%s5547_s25] sm:$0xf]  ;;  %v4179_v37 = vld [vmem:[#allocation10 + $0x28] sm:$0xff]   ;;  %v4181_v2 = vld [vmem:[#allocation10 + $0x18] sm:$0xff]  }
 0x765   : > { %3749 = vmatprep.subr.bf16.mxu0 %v4459_v1  ;;  %v2522_v22 = vrot.slane %v5399_v62, %v1721_v10  ;;  %v4180_v21 = vld [vmem:[#allocation10 + $0x20] sm:$0xff]   ;;  %v4182_v27 = vld [vmem:[#allocation10 + $0x10] sm:$0xff]   ;;  %v4183_v34 = vld [vmem:[#allocation10 + $0x8] sm:$0xff]   ;;  %v2646_v54 = vrot.slane %v5399_v62, %v2141_v41 }
 0x766   : > { %3768 = vmatpush3.bf16.msra.mxu1 %v4170_v51  ;;  %v2736_v29 = vld [vmem:[%s5548_s4] sm:$0x1]  ;;  %v4185_v61 = vld [vmem:[#allocation11 + $0x38] sm:$0xff]   ;;  %v4186_v39 = vld [vmem:[#allocation11 + $0x30] sm:$0xff]  }
 0x767   : > { %3769 = vmatprep.subr.bf16.mxu1 %v4459_v1  ;;  %v4184_v28 = vld [vmem:[#allocation10] sm:$0xff]   ;;  %v4187_v33 = vld [vmem:[#allocation11 + $0x28] sm:$0xff]   ;;  %v4189_v38 = vld [vmem:[#allocation11 + $0x18] sm:$0xff]  }
 0x768   : > { %3750 = vmatpush3.bf16.msra.mxu0 %v4163_v40  ;;  %v4188_v30 = vld [vmem:[#allocation11 + $0x20] sm:$0xff]   ;;  %v4190_v40 = vld [vmem:[#allocation11 + $0x10] sm:$0xff]  }
 0x769   : > { %3751 = vmatprep.subr.bf16.mxu0 %v4459_v1  ;;  %v3383_v57 = vld [vmem:[%s5549_s7] ss:$0 sm:$0xff] }
 0x76a   : > { %3770 = vmatpush3.bf16.msra.mxu1 %v4171_v44 }
 0x76b   : > { %3771 = vmatprep.subr.bf16.mxu1 %v4459_v1 }
 0x76c   : > { %3752 = vmatpush3.bf16.msra.mxu0 %v4164_v59  ;;  %v4191_v59 = vld [vmem:[#allocation11 + $0x8] sm:$0xff]  }
 0x76d   : > { %3753 = vmatprep.subr.bf16.mxu0 %v4459_v1 }
 0x76e   : > { %3772 = vmatpush3.bf16.msra.mxu1 %v4172_v56 }
 0x76f   : > { %3773 = vmatprep.subr.bf16.mxu1 %v4459_v1 }
 0x770   : > { %3754 = vmatpush3.bf16.msra.mxu0 %v4165_v31  ;;  %v4192_v31 = vld [vmem:[#allocation11] sm:$0xff]  }
 0x771   : > { %3755 = vmatprep.subr.bf16.mxu0 %v4459_v1 }
 0x772   : > { %3774 = vmatpush3.bf16.msra.mxu1 %v4173_v4 }
 0x773   : > { %3775 = vmatprep.subr.bf16.mxu1 %v4459_v1 }
 0x774   : > { %3756 = vmatpush3.bf16.msra.mxu0 %v4166_v42  ;;  %v2801_v42 = vrot.slane %v5399_v62, %v2402_v14 }
 0x775   : > { %3757 = vmatprep.subr.bf16.mxu0 %v4459_v1 }
 0x776   : > { %3776 = vmatpush3.bf16.msra.mxu1 %v4174_v0 }
 0x777   : > { %3777 = vmatprep.subr.bf16.mxu1 %v4459_v1 }
 0x778   : > { %3758 = vmatpush3.bf16.msra.mxu0 %v4167_v43 }
 0x779   : > { %3759 = vmatprep.subr.bf16.mxu0 %v4459_v1 }
 0x77a   : > { %3778 = vmatpush3.bf16.msra.mxu1 %v4175_v35 }
 0x77b   : > { %3779 = vmatprep.subr.bf16.mxu1 %v4459_v1 }
 0x77c   : > { %3760 = vmatpush3.bf16.msra.mxu0 %v4168_v46 }
 0x77d   : > { %3785 = vmatprep.subr.bf16.mxu0 %v4459_v1 }
 0x77e   : > { %3780 = vmatpush3.bf16.msra.mxu1 %v4176_v60 }
 0x77f   : > { %3762 = vmatmul.mubr.bf16.vlgmr.msra.gmra.mxu0 %v2502_v5  ;;  %3791 = vmatprep.subr.bf16.mxu1 %v4459_v1 }
 0x780   : > { %3787 = vmatprep.mubr.msk.bf16.mxu0 %vm4460_vm7, %v4459_v1 }
 0x83f   : > { %v2605_v16 = vpop.f32.mrf.mxu0 }
 0x840   : > { %v2606_v36 = vadd.f32 %v2605_v16, %v2522_v22 }
 0x841   : > { %v3763_v48 = vpop.f32.mrf.mxu0 }
 0x842   : > { %v3363_v3 = vmul.f32 -1.442695, %v2606_v36 }
 0x843   : > { %v2608_v12 = vpop.f32.mrf.mxu0 }
 0x844   : > { %4193 = vpow2.f32 %v3363_v3  ;;  %v2609_v19 = vadd.f32 %v2608_v12, %v2522_v22 }
 0x845   : > { %v3764_v7 = vpop.f32.mrf.mxu0 }
 0x846   : > { %v3364_v26 = vmul.f32 -1.442695, %v2609_v19 }
 0x848   : > { %4195 = vpow2.f32 %v3364_v26 }
 0x851   : > { %v4194_v45 = vpop.eup %4193 }
 0x852   : > { %v2618_v8 = vadd.f32 1.0, %v4194_v45 }
 0x854   : > { %4197 = vrcp.f32 %v2618_v8 }
 0x855   : > { %v4196_v11 = vpop.eup %4195 }
 0x856   : > { %v2619_v49 = vadd.f32 1.0, %v4196_v11 }
 0x858   : > { %4199 = vrcp.f32 %v2619_v49 }
 0x861   : > { %v4198_v15 = vpop.eup %4197 }
 0x862   : > { %v2624_v18 = vmul.f32 %v4198_v15, %v2606_v36 }
 0x865   : > { %v4200_v13 = vpop.eup %4199 }
 0x866   : > { %v2625_v10 = vmul.f32 %v4200_v13, %v2609_v19 }
 0x868   : > { %v2626_v20 = vpack.c.bf16 %v2625_v10, %v2624_v18 }
 0x86a   : > { %3782 = vmatmul.mubr.bf16.vlgmr.msra.gmra.mxu1 %v2626_v20 }
 0x86b   : > { %3807 = vmatprep.mubr.msk.bf16.mxu1 %vm4460_vm7, %v4459_v1  ;;  %3792 = vmatpush3.bf16.msra.mxu1 %v4177_v58 }
 0x86c   : > { %3793 = vmatprep.subr.bf16.mxu1 %v4459_v1 }
 0x86f   : > { %3794 = vmatpush3.bf16.msra.mxu1 %v4178_v6 }
 0x870   : > { %3795 = vmatprep.subr.bf16.mxu1 %v4459_v1 }
 0x873   : > { %3796 = vmatpush3.bf16.msra.mxu1 %v4179_v37 }
 0x874   : > { %3797 = vmatprep.subr.bf16.mxu1 %v4459_v1 }
 0x877   : > { %3798 = vmatpush3.bf16.msra.mxu1 %v4180_v21 }
 0x878   : > { %3799 = vmatprep.subr.bf16.mxu1 %v4459_v1 }
 0x87b   : > { %3800 = vmatpush3.bf16.msra.mxu1 %v4181_v2 }
 0x87c   : > { %3801 = vmatprep.subr.bf16.mxu1 %v4459_v1 }
 0x87f   : > { %3802 = vmatpush3.bf16.msra.mxu1 %v4182_v27 }
 0x880   : > { %3803 = vmatprep.subr.bf16.mxu1 %v4459_v1 }
 0x883   : > { %3804 = vmatpush3.bf16.msra.mxu1 %v4183_v34 }
 0x884   : > { %3805 = vmatprep.subr.bf16.mxu1 %v4459_v1 }
 0x887   : > { %3806 = vmatpush3.bf16.msra.mxu1 %v4184_v28 }
 0x92a   : > { %v2729_v24 = vpop.f32.mrf.mxu1 }
 0x92b   : > { %v2730_v50 = vadd.f32 %v2729_v24, %v2646_v54 }
 0x92c   : > { %v3783_v53 = vpop.f32.mrf.mxu1 }
 0x92e   : > { %v2732_v9 = vpop.f32.mrf.mxu1 }
 0x92f   : > { %v2733_v17 = vadd.f32 %v2732_v9, %v2646_v54 }
 0x930   : > { %v3784_v25 = vpop.f32.mrf.mxu1 }
 0x931   : > { %v2737_v23 = vpack.c.bf16 %v2733_v17, %v2730_v50 }
 0x933   : > { %3786 = vmatpush3.bf16.msra.mxu0 %v2737_v23 }
 0x934   : > { %3811 = vmatprep.subr.bf16.mxu0 %v4459_v1 }
 0x936   : > { %3788 = vmatmul.mubr.msk.bf16.vlgmr.msra.gmra.mxu0 %vm1142_vm4, %v2736_v29 }
 0x937   : > { %3827 = vmatprep.mubr.msk.bf16.mxu0 %vm4460_vm7, %v4459_v1  ;;  %3812 = vmatpush3.bf16.msra.mxu0 %v4185_v61 }
 0x938   : > { %3813 = vmatprep.subr.bf16.mxu0 %v4459_v1 }
 0x93b   : > { %3814 = vmatpush3.bf16.msra.mxu0 %v4186_v39 }
 0x93c   : > { %3815 = vmatprep.subr.bf16.mxu0 %v4459_v1 }
 0x93f   : > { %3816 = vmatpush3.bf16.msra.mxu0 %v4187_v33 }
 0x940   : > { %3817 = vmatprep.subr.bf16.mxu0 %v4459_v1 }
 0x943   : > { %3818 = vmatpush3.bf16.msra.mxu0 %v4188_v30 }
 0x944   : > { %3819 = vmatprep.subr.bf16.mxu0 %v4459_v1 }
 0x947   : > { %3820 = vmatpush3.bf16.msra.mxu0 %v4189_v38 }
 0x948   : > { %3821 = vmatprep.subr.bf16.mxu0 %v4459_v1 }
 0x94b   : > { %3822 = vmatpush3.bf16.msra.mxu0 %v4190_v40 }
 0x94c   : > { %3823 = vmatprep.subr.bf16.mxu0 %v4459_v1 }
 0x94f   : > { %3824 = vmatpush3.bf16.msra.mxu0 %v4191_v59 }
 0x950   : > { %3825 = vmatprep.subr.bf16.mxu0 %v4459_v1 }
 0x953   : > { %3826 = vmatpush3.bf16.msra.mxu0 %v4192_v31 }
 0x9f6   : > { %v2775_v41 = vpop.f32.mrf.mxu0 }
 0x9f7   : > { %v2781_v32 = vpack.c.bf16 %v2775_v41, %v2775_v41 }
 0x9f8   : > { %v3789_v63 = vpop.f32.mrf.mxu0 }
 0x9f9   : > { %3808 = vmatmul.mubr.bf16.vlgmr.msra.gmra.mxu1 %v2781_v32 }
 0x9fa   : > { %v2778_v52 = vpop.f32.mrf.mxu0 }
 0x9fc   : > { %v3790_v55 = vpop.f32.mrf.mxu0 }
 0xab9   : > { %v2884_v43 = vpop.f32.mrf.mxu1 }
 0xaba   : > { %v2885_v46 = vadd.f32 %v2884_v43, %v2801_v42 }
 0xabb   : > { %v3809_v5 = vpop.f32.mrf.mxu1 }
 0xabc   : > { %v3382_v47 = vmul.f32 -1.442695, %v2885_v46 }
 0xabd   : > { %v2887_v51 = vpop.f32.mrf.mxu1 }
 0xabe   : > { %4201 = vpow2.f32 %v3382_v47 }
 0xabf   : > { %v3810_v44 = vpop.f32.mrf.mxu1 }
 0xacb   : > { %v4202_v56 = vpop.eup %4201 }
 0xacc   : > { %v2893_v4 = vadd.f32 1.0, %v4202_v56 }
 0xace   : > { %4203 = vrcp.f32 %v2893_v4 }
 0xadb   : > { %v4204_v0 = vpop.eup %4203 }
 0xadc   : > { %v2896_v35 = vmul.f32 %v4204_v0, %v2885_v46 }
 0xade   : > { %v2897_v60 = vpack.c.bf16 %v2896_v35, %v2896_v35 }
 0xae0   : > { %3828 = vmatmul.mubr.bf16.vlgmr.msra.gmra.mxu0 %v2897_v60 }
 0xba0   : > { %v3003_v1 = vpop.f32.mrf.mxu0 }
 0xba1   : > { %v3004_v14 = vadd.f32 %v3383_v57, %v3003_v1 }
 0xba2   : > { %v3829_v62 = vpop.f32.mrf.mxu0 }
 0xba3   : > { %3009 = vst [vmem:[%s5550_s5] sm:$0x3] %v3004_v14 }
 0xba4   : > { %v3006_v22 = vpop.f32.mrf.mxu0 }
 0xba6   : > { %v3830_v16 = vpop.f32.mrf.mxu0 }
 0xba7 PF: > { %p3885_p12 = scmp.eq.s32.totalorder %s4588_s2, 3  ;;  %s4461_s27 = smov [#allocation13]  }
 0xba8   : > { %s3016_s20 = sshll.u32 %s4461_s27, 4  ;;  %s3017_s20 = int_to_ptr.vmem [resolvable:$true] %s3016_s20 }
 0xba9   : > { %s4367_s30 = scalar_lea.vmem %s3017_s20, 256  ;;  %p4374_p7 = scmp.lt.s32.totalorder %s3017_s20, %s3017_s20 }
 0xbaa   : > { %p4368_p1 = scmp.ne.s32.totalorder %s3017_s20, %s4367_s30  ;;  %p4375_p5 = scmp.lt.s32.totalorder %s4367_s30, %s4367_s30 }
 0xbac   : > { %p4369_p6 = pnand %p4368_p1, %p3885_p12  ;;  %p4376_p11 = por %p4375_p5, %p4374_p7 }
 0xbae   : > { %p4370_p2 = pneg %p4369_p6 }
 0xbb0   : > { %p4377_p0 = pnand %p4376_p11, %p4370_p2 }
 0xbb2   : > { %4380 = shalt.err (!%p4377_p0)
}
 0xbb3   : > { %s4462_s1 = smov 128   ;;  %s4463_s0 = smov 8  }
 0xbb4   : > { %s5551_s29 = sld [smem:[#allocation33_spill]] }
 0xbba   : > { %3855 = dma.vmem_to_hbm [thread:$0]  (%p3885_p12), %s3017_s20, 256, %s5551_s29, [#allocation4], %s4462_s1, %s4462_s1, %s4463_s0  }
 0xbbb   : > { %4424 = dma.done.wait (%p3885_p12), [#allocation4], 256  }
 0xbbc   : > { %4426 = vsyncadd (%p3885_p12), [#allocation4], 4294967040 }
 0xbbd PF: > { %s5552_s24 = sld [smem:[#allocation20_spill]]  ;;  %s5555_s1 = smov %s4433_s22 }
 0xbbe   : > { %s5553_s4 = sld [smem:[#allocation19_spill]] }
 0xbbf   : > { %s5554_s23 = sld [smem:[#allocation21_spill]] }
 0xbc3   : > { %p37_p4 = scmp.ge.s32.totalorder %s5552_s24, 6  }
 0xbc4   : > { %s5556_s22 = smov %s5553_s4 }
 0xbc5   :  { %39 = sbr.rel (!%p37_p4) target bundleno = 22 (0x16), region = 194 }
 0xbca   :  { %3038 = vsyncpa [#allocation3], 1 }
 0xbcb   :  { %3040 = vsyncpa [#allocation3 + $0x1], 1 }
 0xbcc   :  { %3041 = vsyncpa [#allocation6], 1 }
 0xbcd   :  { %3043 = vsyncpa [#allocation6 + $0x1], 1 }
 0xbce   :  { %3044 = vsyncpa [#allocation9], 1 }
 0xbcf   :  { %3045 = vsyncpa [#allocation12], 1 }
 0xbd0   :  { %3046 = vsyncpa [#allocation4], 1 }
 0xbd1   :  { %3048 = vsyncpa [#allocation4 + $0x1], 1 }

</bundles_post_ra>
